<compile_context>
chip_gen: v7x
topology: tpu7x:2x2x1
jax: 0.10.0
libtpu: 0.0.40
codegen_flags: <defaults>
</compile_context>

<pallas_src>
import functools

import jax
import jax.numpy as jnp
import numpy as np
from jax import lax
from jax.experimental import pallas as pl
from jax.experimental.pallas import tpu as pltpu

_EPS = 1e-07
_LANE = 128
_ROW = 512                       # 128 boxes * 4 interleaved components per row
_PAD_BOXES = 8 * _LANE           # pad granule: keeps rows a multiple of 8
_DEF_BLOCK_ROWS = 1024           # rows per grid step (tunable)
_DEF_VMEM_LIMIT = 48 << 20


# ---------------------------------------------------------------------------
# In-kernel helpers
# ---------------------------------------------------------------------------
def _take_right(x, s):
    """y[..., l] = x[..., l + s] (lane rotation; wrapped lanes are never used)."""
    n = x.shape[-1]
    return pltpu.roll(x, shift=(n - s) % n, axis=x.ndim - 1)


def _take_left(x, s):
    """y[..., l] = x[..., l - s]."""
    return pltpu.roll(x, shift=s, axis=x.ndim - 1)


def _interleaved_giou_loss(p, t, is01, *, wh_to_xy, approx_reciprocal):
    """p, t: (R, 512) f32 slabs, lanes = [c0, c1, c2, c3] per box.

    Returns an (R, 512) f32 array whose lanes = 0 (mod 4) hold the per-box loss
    (1 - giou); the remaining lanes hold don't-care values.
    """
    if wh_to_xy:
        def cxcywh_to_xyxy(b):
            half = b * 0.5
            # lanes 0,1: cx - w/2, cy - h/2 ; lanes 2,3: cx + w/2, cy + h/2
            return jnp.where(is01, b - _take_right(half, 2),
                             _take_left(b, 2) + half)
        p = cxcywh_to_xyxy(p)
        t = cxcywh_to_xyxy(t)

    def pair_area(box, clamp):
        # width/height at lanes 0,1 ; their product (the area) at lane 0.
        d = _take_right(box, 2) - box
        if clamp:
            d = jnp.maximum(d, 0.0)
        return d * _take_right(d, 1)

    area_p = pair_area(p, clamp=False)
    area_t = pair_area(t, clamp=False)

    mx = jnp.maximum(p, t)
    mn = jnp.minimum(p, t)
    inter_box = jnp.where(is01, mx, mn)      # [ix1, iy1, ix2, iy2]
    encl_box = jnp.where(is01, mn, mx)       # [ex1, ey1, ex2, ey2]

    inters = pair_area(inter_box, clamp=True)
    enclose = pair_area(encl_box, clamp=True) + _EPS
    uni = area_p + area_t - inters + _EPS

    if approx_reciprocal:
        # EUP slot is otherwise idle; ~1e-3 relative error (opt-in).
        ious = inters * pl.reciprocal(uni, approx=True)
        giou = ious - (enclose - uni) * pl.reciprocal(enclose, approx=True)
    else:
        ious = inters / uni
        giou = ious - (enclose - uni) / enclose
    return 1.0 - giou


def _compact_lanes(loss, is0):
    """(R, 512) with valid data at lanes = 0 (mod 4) -> dense (R, 128).

    Uses a constant 0/1 selection matmul on the idle MXU.  The f32 operand is
    split into three exactly-representable bf16 chunks so the result is exact
    irrespective of the MXU's native f32 matmul precision.
    """
    loss = jnp.where(is0, loss, 0.0)         # zero don't-care lanes (and NaNs)
    src = lax.broadcasted_iota(jnp.int32, (_ROW, _LANE), 0)
    dst = lax.broadcasted_iota(jnp.int32, (_ROW, _LANE), 1)
    sel = (src == dst * 4).astype(jnp.bfloat16)

    hi = loss.astype(jnp.bfloat16)
    r = loss - hi.astype(jnp.float32)
    mid = r.astype(jnp.bfloat16)
    lo = (r - mid.astype(jnp.float32)).astype(jnp.bfloat16)

    out = jnp.dot(hi, sel, preferred_element_type=jnp.float32)
    out += jnp.dot(mid, sel, preferred_element_type=jnp.float32)
    out += jnp.dot(lo, sel, preferred_element_type=jnp.float32)
    return out


# ---------------------------------------------------------------------------
# Kernels
# ---------------------------------------------------------------------------
def _giou_elem_kernel(p_ref, t_ref, out_ref, *, wh_to_xy, approx_reciprocal):
    lane = lax.broadcasted_iota(jnp.int32, (1, _ROW), 1)
    is01 = (lane & 2) == 0
    is0 = (lane & 3) == 0

    loss = _interleaved_giou_loss(
        p_ref[...].astype(jnp.float32), t_ref[...].astype(jnp.float32),
        is01, wh_to_xy=wh_to_xy, approx_reciprocal=approx_reciprocal)

    out_ref[...] = _compact_lanes(loss, is0)


def _giou_reduce_kernel(p_ref, t_ref, psum_ref, *, wh_to_xy, approx_reciprocal,
                        n_boxes, block_rows, blocks_per_split):
    @pl.when(pl.program_id(1) == 0)
    def _():
        psum_ref[...] = jnp.zeros_like(psum_ref)

    lane = lax.broadcasted_iota(jnp.int32, (1, _ROW), 1)
    is01 = (lane & 2) == 0
    is0 = (lane & 3) == 0

    loss = _interleaved_giou_loss(
        p_ref[...].astype(jnp.float32), t_ref[...].astype(jnp.float32),
        is01, wh_to_xy=wh_to_xy, approx_reciprocal=approx_reciprocal)

    # Mask out non-loss lanes, pad boxes, and any rows a partial trailing block
    # (or a duplicated/clamped block on the core-split axis) read out of bounds.
    block = pl.program_id(0) * blocks_per_split + pl.program_id(1)
    row = lax.broadcasted_iota(jnp.int32, (block_rows, 1), 0)
    box = (block * block_rows + row) * _LANE + (lane >> 2)
    loss = jnp.where(is0 & (box < n_boxes), loss, 0.0)

    # Per-sublane/per-lane partial sums (VALU only); the final (8, 512) -> scalar
    # reduction is finished on the host.
    psum_ref[...] += jnp.sum(loss.reshape(block_rows // 8, 8, _ROW), axis=0)


# ---------------------------------------------------------------------------
# Wrapper
# ---------------------------------------------------------------------------
def _to_rows(x, m, m_pad):
    """(..., 4) -> (rows, 512) interleaved view; pure reshape when m%1024 == 0."""
    if x.dtype not in (jnp.float32, jnp.bfloat16, jnp.float16):
        x = x.astype(jnp.float32)
    flat = x.reshape(m * 4)
    if m_pad != m:
        flat = jnp.pad(flat, (0, (m_pad - m) * 4))
    return flat.reshape(m_pad // _LANE, _ROW)


def giou_loss(predict, target, *, wh_to_xy=True, reduction="none",
              return_g_iou=False, block_rows=_DEF_BLOCK_ROWS,
              approx_reciprocal=False, vmem_limit_bytes=_DEF_VMEM_LIMIT):
    """Pallas GIoU loss.  predict/target: (..., 4)."""
    assert predict.shape == target.shape and predict.shape[-1] == 4
    assert reduction in ("none", "mean", "sum")
    lead_shape = predict.shape[:-1]
    m = int(np.prod(lead_shape)) if lead_shape else 1

    m_pad = -(-m // _PAD_BOXES) * _PAD_BOXES
    rows = m_pad // _LANE                       # multiple of 8
    block_rows = min(block_rows, rows)
    block_rows = max(8, (block_rows // 8) * 8)  # keep (8, 128) alignment
    n_blocks = pl.cdiv(rows, block_rows)

    p2d = _to_rows(predict, m, m_pad)
    t2d = _to_rows(target, m, m_pad)

    fused_reduce = (reduction in ("mean", "sum")) and not return_g_iou

    if fused_reduce:
        num_splits = 2 if n_blocks >= 2 else 1   # v7x: one split per TensorCore
        bpc = pl.cdiv(n_blocks, num_splits)

        def in_map(c, i):
            # Clamp keeps the trailing (possibly duplicated) block in-bounds;
            # its contribution is masked out inside the kernel.
            return (jnp.minimum(c * bpc + i, n_blocks - 1), 0)

        kernel = functools.partial(
            _giou_reduce_kernel, wh_to_xy=wh_to_xy,
            approx_reciprocal=approx_reciprocal, n_boxes=m,
            block_rows=block_rows, blocks_per_split=bpc)

        psum = pl.pallas_call(
            kernel,
            out_shape=jax.ShapeDtypeStruct((num_splits * 8, _ROW), jnp.float32),
            grid_spec=pltpu.PrefetchScalarGridSpec(
                num_scalar_prefetch=0,
                grid=(num_splits, bpc),
                in_specs=[pl.BlockSpec((block_rows, _ROW), in_map),
                          pl.BlockSpec((block_rows, _ROW), in_map)],
                out_specs=pl.BlockSpec((8, _ROW), lambda c, i: (c, 0)),
            ),
            compiler_params=pltpu.CompilerParams(
                dimension_semantics=("parallel", "arbitrary"),
                vmem_limit_bytes=vmem_limit_bytes),
        )(p2d, t2d)

        total = jnp.sum(psum)
        if reduction == "mean":
            return total / jnp.float32(m)
        return total

    kernel = functools.partial(_giou_elem_kernel, wh_to_xy=wh_to_xy,
                               approx_reciprocal=approx_reciprocal)
    out2d = pl.pallas_call(
        kernel,
        out_shape=jax.ShapeDtypeStruct((rows, _LANE), jnp.float32),
        grid_spec=pltpu.PrefetchScalarGridSpec(
            num_scalar_prefetch=0,
            grid=(n_blocks,),
            in_specs=[pl.BlockSpec((block_rows, _ROW), lambda i: (i, 0)),
                      pl.BlockSpec((block_rows, _ROW), lambda i: (i, 0))],
            out_specs=pl.BlockSpec((block_rows, _LANE), lambda i: (i, 0)),
        ),
        compiler_params=pltpu.CompilerParams(
            dimension_semantics=("parallel",),
            vmem_limit_bytes=vmem_limit_bytes),
    )(p2d, t2d)

    loss_flat = out2d.reshape(m_pad)
    if m_pad != m:
        loss_flat = loss_flat[:m]
    loss = loss_flat.reshape(lead_shape)

    if reduction == "mean":
        out_loss = jnp.mean(loss)
    elif reduction == "sum":
        out_loss = jnp.sum(loss)
    else:
        out_loss = loss

    if return_g_iou:
        giou = 1.0 - loss   # derived on host; avoids a second kernel output
        return out_loss, giou
    return out_loss


# ---------------------------------------------------------------------------
# Pure-JAX reference (mirrors the PyTorch module, reduction='none')
# ---------------------------------------------------------------------------
def _giou_loss_ref(predict, target, wh_to_xy=True):
    p, t = predict.astype(jnp.float32), target.astype(jnp.float32)
    if wh_to_xy:
        p = jnp.concatenate([p[..., :2] - p[..., 2:] * 0.5,
                             p[..., :2] + p[..., 2:] * 0.5], axis=-1)
        t = jnp.concatenate([t[..., :2] - t[..., 2:] * 0.5,
                             t[..., :2] + t[..., 2:] * 0.5], axis=-1)
    ix1 = jnp.maximum(p[..., 0], t[..., 0]); iy1 = jnp.maximum(p[..., 1], t[..., 1])
    ix2 = jnp.minimum(p[..., 2], t[..., 2]); iy2 = jnp.minimum(p[..., 3], t[..., 3])
    inters = jnp.clip(ix2 - ix1, 0.0) * jnp.clip(iy2 - iy1, 0.0)
    uni = ((p[..., 2] - p[..., 0]) * (p[..., 3] - p[..., 1])
           + (t[..., 2] - t[..., 0]) * (t[..., 3] - t[..., 1]) - inters + _EPS)
    ious = inters / uni
    ex1 = jnp.minimum(p[..., 0], t[..., 0]); ey1 = jnp.minimum(p[..., 1], t[..., 1])
    ex2 = jnp.maximum(p[..., 2], t[..., 2]); ey2 = jnp.maximum(p[..., 3], t[..., 3])
    enclose = jnp.clip(ex2 - ex1, 0.0) * jnp.clip(ey2 - ey1, 0.0) + _EPS
    giou = ious - (enclose - uni) / enclose
    return 1.0 - giou


if __name__ == "__main__":
    key = jax.random.PRNGKey(0)
    kp, kt = jax.random.split(key)

    # 2 images x 512 boxes (cxcywh) -> M = 1024 boxes: exercises the zero-copy
    # (pure-reshape) input path.
    batch, n_boxes = 2, 512
    predict = jax.random.uniform(kp, (batch, n_boxes, 4), jnp.float32,
                                 minval=0.5, maxval=4.0)
    target = jax.random.uniform(kt, (batch, n_boxes, 4), jnp.float32,
                                minval=0.5, maxval=4.0)

    ref = _giou_loss_ref(predict, target, wh_to_xy=True)

    # reduction='none' (default module config)
    loss = jax.block_until_ready(
        giou_loss(predict, target, wh_to_xy=True, reduction="none"))
    np.testing.assert_allclose(np.asarray(loss), np.asarray(ref),
                               rtol=1e-5, atol=1e-5)

    # Fused in-kernel reductions
    loss_mean = jax.block_until_ready(
        giou_loss(predict, target, wh_to_xy=True, reduction="mean"))
    np.testing.assert_allclose(np.asarray(loss_mean),
                               np.asarray(jnp.mean(ref)), rtol=1e-5, atol=1e-5)

    loss_sum = jax.block_until_ready(
        giou_loss(predict, target, wh_to_xy=True, reduction="sum"))
    np.testing.assert_allclose(np.asarray(loss_sum),
                               np.asarray(jnp.sum(ref)), rtol=1e-5, atol=1e-4)

    # Box count not a multiple of 128 (exercises the padded path), xyxy inputs,
    # return_g_iou=True.
    p_small = predict[:, :9]
    t_small = target[:, :9]
    p_xyxy = jnp.concatenate([p_small[..., :2] - p_small[..., 2:] * 0.5,
                              p_small[..., :2] + p_small[..., 2:] * 0.5], axis=-1)
    t_xyxy = jnp.concatenate([t_small[..., :2] - t_small[..., 2:] * 0.5,
                              t_small[..., :2] + t_small[..., 2:] * 0.5], axis=-1)
    l2, giou2 = giou_loss(p_xyxy, t_xyxy, wh_to_xy=False, reduction="none",
                          return_g_iou=True)
    l2 = jax.block_until_ready(l2)
    ref2 = _giou_loss_ref(p_xyxy, t_xyxy, wh_to_xy=False)
    np.testing.assert_allclose(np.asarray(l2), np.asarray(ref2),
                               rtol=1e-5, atol=1e-5)
    np.testing.assert_allclose(np.asarray(giou2), np.asarray(1.0 - ref2),
                               rtol=1e-5, atol=1e-5)

    print("KERNEL_OK")
</pallas_src>

<mosaic_0001>
module attributes {stable_mosaic.version = 11 : i64} {
  func.func @_giou_elem_kernel(%arg0: i32, %arg1: memref<8x512xf32, #tpu.memory_space<vmem>>, %arg2: memref<8x512xf32, #tpu.memory_space<vmem>>, %arg3: memref<8x128xf32, #tpu.memory_space<vmem>>) attributes {dimension_semantics = [#tpu.dimension_semantics<parallel>], iteration_bounds = array<i64: 1>, scalar_prefetch = 0 : i64, scratch_operands = 0 : i64, tpu.core_type = #tpu.core_type<tc>, window_params = [{transform_indices = @transform_0, window_bounds = array<i64: 8, 512>}, {transform_indices = @transform_1, window_bounds = array<i64: 8, 512>}, {transform_indices = @transform_2, window_bounds = array<i64: 8, 128>}]} {
    %0 = tpu.iota {dimensions = array<i32: 1>} : vector<1x512xi32>
    %c2_i32 = arith.constant 2 : i32
    %1 = vector.broadcast %c2_i32 : i32 to vector<1x512xi32>
    %2 = arith.andi %0, %1 : vector<1x512xi32>
    %c0_i32 = arith.constant 0 : i32
    %3 = vector.broadcast %c0_i32 : i32 to vector<1x512xi32>
    %4 = arith.cmpi eq, %2, %3 : vector<1x512xi32>
    %c3_i32 = arith.constant 3 : i32
    %5 = vector.broadcast %c3_i32 : i32 to vector<1x512xi32>
    %6 = arith.andi %0, %5 : vector<1x512xi32>
    %c0_i32_0 = arith.constant 0 : i32
    %7 = vector.broadcast %c0_i32_0 : i32 to vector<1x512xi32>
    %8 = arith.cmpi eq, %6, %7 : vector<1x512xi32>
    %c0 = arith.constant 0 : index
    %c0_1 = arith.constant 0 : index
    %9 = vector.load %arg1[%c0, %c0_1] : memref<8x512xf32, #tpu.memory_space<vmem>>, vector<8x512xf32>
    %c0_2 = arith.constant 0 : index
    %c0_3 = arith.constant 0 : index
    %10 = vector.load %arg2[%c0_2, %c0_3] : memref<8x512xf32, #tpu.memory_space<vmem>>, vector<8x512xf32>
    %cst = arith.constant 5.000000e-01 : f32
    %11 = vector.broadcast %cst : f32 to vector<8x512xf32>
    %12 = arith.mulf %9, %11 : vector<8x512xf32>
    %c510_i32 = arith.constant 510 : i32
    %13 = tpu.dynamic_rotate %12 by %c510_i32 dim 1 : vector<8x512xf32>, i32 -> vector<8x512xf32>
    %14 = arith.subf %9, %13 : vector<8x512xf32>
    %c2_i32_4 = arith.constant 2 : i32
    %15 = tpu.dynamic_rotate %9 by %c2_i32_4 dim 1 : vector<8x512xf32>, i32 -> vector<8x512xf32>
    %16 = arith.addf %15, %12 : vector<8x512xf32>
    %17 = vector.shape_cast %4 : vector<1x512xi1> to vector<1x512xi1>
    %18 = vector.broadcast %17 : vector<1x512xi1> to vector<8x512xi1>
    %19 = arith.select %18, %14, %16 : vector<8x512xi1>, vector<8x512xf32>
    %cst_5 = arith.constant 5.000000e-01 : f32
    %20 = vector.broadcast %cst_5 : f32 to vector<8x512xf32>
    %21 = arith.mulf %10, %20 : vector<8x512xf32>
    %c510_i32_6 = arith.constant 510 : i32
    %22 = tpu.dynamic_rotate %21 by %c510_i32_6 dim 1 : vector<8x512xf32>, i32 -> vector<8x512xf32>
    %23 = arith.subf %10, %22 : vector<8x512xf32>
    %c2_i32_7 = arith.constant 2 : i32
    %24 = tpu.dynamic_rotate %10 by %c2_i32_7 dim 1 : vector<8x512xf32>, i32 -> vector<8x512xf32>
    %25 = arith.addf %24, %21 : vector<8x512xf32>
    %26 = vector.shape_cast %4 : vector<1x512xi1> to vector<1x512xi1>
    %27 = vector.broadcast %26 : vector<1x512xi1> to vector<8x512xi1>
    %28 = arith.select %27, %23, %25 : vector<8x512xi1>, vector<8x512xf32>
    %c510_i32_8 = arith.constant 510 : i32
    %29 = tpu.dynamic_rotate %19 by %c510_i32_8 dim 1 : vector<8x512xf32>, i32 -> vector<8x512xf32>
    %30 = arith.subf %29, %19 : vector<8x512xf32>
    %c511_i32 = arith.constant 511 : i32
    %31 = tpu.dynamic_rotate %30 by %c511_i32 dim 1 : vector<8x512xf32>, i32 -> vector<8x512xf32>
    %32 = arith.mulf %30, %31 : vector<8x512xf32>
    %c510_i32_9 = arith.constant 510 : i32
    %33 = tpu.dynamic_rotate %28 by %c510_i32_9 dim 1 : vector<8x512xf32>, i32 -> vector<8x512xf32>
    %34 = arith.subf %33, %28 : vector<8x512xf32>
    %c511_i32_10 = arith.constant 511 : i32
    %35 = tpu.dynamic_rotate %34 by %c511_i32_10 dim 1 : vector<8x512xf32>, i32 -> vector<8x512xf32>
    %36 = arith.mulf %34, %35 : vector<8x512xf32>
    %37 = arith.maximumf %19, %28 : vector<8x512xf32>
    %38 = arith.minimumf %19, %28 : vector<8x512xf32>
    %39 = vector.shape_cast %4 : vector<1x512xi1> to vector<1x512xi1>
    %40 = vector.broadcast %39 : vector<1x512xi1> to vector<8x512xi1>
    %41 = arith.select %40, %37, %38 : vector<8x512xi1>, vector<8x512xf32>
    %42 = vector.shape_cast %4 : vector<1x512xi1> to vector<1x512xi1>
    %43 = vector.broadcast %42 : vector<1x512xi1> to vector<8x512xi1>
    %44 = arith.select %43, %38, %37 : vector<8x512xi1>, vector<8x512xf32>
    %c510_i32_11 = arith.constant 510 : i32
    %45 = tpu.dynamic_rotate %41 by %c510_i32_11 dim 1 : vector<8x512xf32>, i32 -> vector<8x512xf32>
    %46 = arith.subf %45, %41 : vector<8x512xf32>
    %cst_12 = arith.constant 0.000000e+00 : f32
    %47 = vector.broadcast %cst_12 : f32 to vector<8x512xf32>
    %48 = arith.maximumf %46, %47 : vector<8x512xf32>
    %c511_i32_13 = arith.constant 511 : i32
    %49 = tpu.dynamic_rotate %48 by %c511_i32_13 dim 1 : vector<8x512xf32>, i32 -> vector<8x512xf32>
    %50 = arith.mulf %48, %49 : vector<8x512xf32>
    %c510_i32_14 = arith.constant 510 : i32
    %51 = tpu.dynamic_rotate %44 by %c510_i32_14 dim 1 : vector<8x512xf32>, i32 -> vector<8x512xf32>
    %52 = arith.subf %51, %44 : vector<8x512xf32>
    %cst_15 = arith.constant 0.000000e+00 : f32
    %53 = vector.broadcast %cst_15 : f32 to vector<8x512xf32>
    %54 = arith.maximumf %52, %53 : vector<8x512xf32>
    %c511_i32_16 = arith.constant 511 : i32
    %55 = tpu.dynamic_rotate %54 by %c511_i32_16 dim 1 : vector<8x512xf32>, i32 -> vector<8x512xf32>
    %56 = arith.mulf %54, %55 : vector<8x512xf32>
    %cst_17 = arith.constant 1.000000e-07 : f32
    %57 = vector.broadcast %cst_17 : f32 to vector<8x512xf32>
    %58 = arith.addf %56, %57 : vector<8x512xf32>
    %59 = arith.addf %32, %36 : vector<8x512xf32>
    %60 = arith.subf %59, %50 : vector<8x512xf32>
    %cst_18 = arith.constant 1.000000e-07 : f32
    %61 = vector.broadcast %cst_18 : f32 to vector<8x512xf32>
    %62 = arith.addf %60, %61 : vector<8x512xf32>
    %63 = arith.divf %50, %62 : vector<8x512xf32>
    %64 = arith.subf %58, %62 : vector<8x512xf32>
    %65 = arith.divf %64, %58 : vector<8x512xf32>
    %66 = arith.subf %63, %65 : vector<8x512xf32>
    %cst_19 = arith.constant 1.000000e+00 : f32
    %67 = vector.broadcast %cst_19 : f32 to vector<8x512xf32>
    %68 = arith.subf %67, %66 : vector<8x512xf32>
    %cst_20 = arith.constant 0.000000e+00 : f32
    %69 = vector.shape_cast %8 : vector<1x512xi1> to vector<1x512xi1>
    %70 = vector.broadcast %69 : vector<1x512xi1> to vector<8x512xi1>
    %71 = vector.broadcast %cst_20 : f32 to vector<8x512xf32>
    %72 = arith.select %70, %68, %71 : vector<8x512xi1>, vector<8x512xf32>
    %73 = tpu.iota {dimensions = array<i32: 0>} : vector<512x128xi32>
    %74 = tpu.iota {dimensions = array<i32: 1>} : vector<512x128xi32>
    %c4_i32 = arith.constant 4 : i32
    %75 = vector.broadcast %c4_i32 : i32 to vector<512x128xi32>
    %76 = arith.muli %74, %75 : vector<512x128xi32>
    %77 = arith.cmpi eq, %73, %76 : vector<512x128xi32>
    %78 = arith.extui %77 : vector<512x128xi1> to vector<512x128xi32>
    %79 = arith.sitofp %78 : vector<512x128xi32> to vector<512x128xf32>
    %80 = arith.truncf %79 : vector<512x128xf32> to vector<512x128xbf16>
    %81 = arith.truncf %72 : vector<8x512xf32> to vector<8x512xbf16>
    %82 = arith.extf %81 : vector<8x512xbf16> to vector<8x512xf32>
    %83 = arith.subf %72, %82 : vector<8x512xf32>
    %84 = arith.truncf %83 : vector<8x512xf32> to vector<8x512xbf16>
    %85 = arith.extf %84 : vector<8x512xbf16> to vector<8x512xf32>
    %86 = arith.subf %83, %85 : vector<8x512xf32>
    %87 = arith.truncf %86 : vector<8x512xf32> to vector<8x512xbf16>
    %cst_21 = arith.constant dense<0.000000e+00> : vector<8x128xf32>
    %88 = tpu.matmul %81, %80, %cst_21 {dimension_numbers = #tpu.dot_dimension_numbers<[1], [0], [0], [1], [0, 0, 1, 1], [], []>} : vector<8x512xbf16>, vector<512x128xbf16>, vector<8x128xf32> -> vector<8x128xf32>
    %cst_22 = arith.constant dense<0.000000e+00> : vector<8x128xf32>
    %89 = tpu.matmul %84, %80, %cst_22 {dimension_numbers = #tpu.dot_dimension_numbers<[1], [0], [0], [1], [0, 0, 1, 1], [], []>} : vector<8x512xbf16>, vector<512x128xbf16>, vector<8x128xf32> -> vector<8x128xf32>
    %90 = arith.addf %88, %89 : vector<8x128xf32>
    %cst_23 = arith.constant dense<0.000000e+00> : vector<8x128xf32>
    %91 = tpu.matmul %87, %80, %cst_23 {dimension_numbers = #tpu.dot_dimension_numbers<[1], [0], [0], [1], [0, 0, 1, 1], [], []>} : vector<8x512xbf16>, vector<512x128xbf16>, vector<8x128xf32> -> vector<8x128xf32>
    %92 = arith.addf %90, %91 : vector<8x128xf32>
    %c0_24 = arith.constant 0 : index
    %c0_25 = arith.constant 0 : index
    %93 = vector.load %arg3[%c0_24, %c0_25] : memref<8x128xf32, #tpu.memory_space<vmem>>, vector<8x128xf32>
    tpu.vector_store %arg3[%c0_24, %c0_25], %92 {strides = array<i32>} : memref<8x128xf32, #tpu.memory_space<vmem>>, vector<8x128xf32>,
    return
  }
  func.func @transform_0(%arg0: i32) -> (i32, i32) {
    %c0_i32 = arith.constant 0 : i32
    %c0_i32_0 = arith.constant 0 : i32
    return %arg0, %c0_i32 : i32, i32
  }
  func.func @transform_1(%arg0: i32) -> (i32, i32) {
    %c0_i32 = arith.constant 0 : i32
    %c0_i32_0 = arith.constant 0 : i32
    return %arg0, %c0_i32 : i32, i32
  }
  func.func @transform_2(%arg0: i32) -> (i32, i32) {
    %c0_i32 = arith.constant 0 : i32
    %c0_i32_0 = arith.constant 0 : i32
    return %arg0, %c0_i32 : i32, i32
  }
}

</mosaic_0001>

<bundles_post_ra>
// kernel: tpu_custom_call.1
= control target key start
LH: loop header
LB: loop body
LE: loop exit
PB: predicated region body
PF: predicated region fallthrough
CT: control target
= control target key end

     0   :  { %7 = vsyncpa [#allocation3], 0  ;;  %s2514_s0 = inlined_call_operand.hbm [shape: f32[8,512], index: 0, kind: input, shape index: {}]   ;;  %s2515_s1 = inlined_call_operand.hbm [shape: f32[8,512], index: 1, kind: input, shape index: {}]   ;;  %s2516_s2 = inlined_call_operand.hbm [shape: f32[8,128], index: 2, kind: output, shape index: {}]  }
   0x1   :  { %8 = vsyncpa [#allocation6], 0 }
   0x2   :  { %9 = vsyncpa [#allocation4], 0  ;;  %s1436_s9 = smov [#allocation2]   ;;  %s1437_s11 = smov [#allocation5]  }
   0x3   :  { %s16_s10 = sshll.u32 %s1436_s9, 4  ;;  %s26_s12 = sshll.u32 %s1437_s11, 4  ;;  %s17_s10 = int_to_ptr.vmem [resolvable:$true] %s16_s10  ;;  %s27_s12 = int_to_ptr.vmem [resolvable:$true] %s26_s12 }
   0x4   :  { %s1364_s15 = scalar_lea.hbm %s2514_s0, 512 }
   0x5   :  { %p1365_p0 = scmp.ne.s32.totalorder %s2514_s0, %s1364_s15  ;;  %p1368_p1 = scmp.lt.u32.totalorder %s1364_s15, %s2514_s0 }
   0x7   :  { %p1370_p2 = pnand %p1368_p1, %p1365_p0 }
   0x9   :  { %1373 = shalt.err (!%p1370_p2)
}
   0xa   :  { %s1374_s20 = scalar_lea.vmem %s17_s10, 512  ;;  %p1379_p4 = scmp.lt.s32.totalorder %s17_s10, %s17_s10 }
   0xb   :  { %p1375_p3 = scmp.ne.s32.totalorder %s17_s10, %s1374_s20  ;;  %p1380_p5 = scmp.lt.s32.totalorder %s1374_s20, %s1374_s20 }
   0xd   :  { %p1381_p6 = por %p1380_p5, %p1379_p4 }
   0xf   :  { %p1382_p7 = pnand %p1381_p6, %p1375_p3 }
  0x11   :  { %1385 = shalt.err (!%p1382_p7)
}
  0x12   :  { %19 = dma.hbm_to_vmem [thread:$0]  %s2514_s0, 512, %s17_s10, [#allocation3]  }
  0x13   :  { %s1386_s25 = scalar_lea.hbm %s2515_s1, 512 }
  0x14   :  { %p1387_p8 = scmp.ne.s32.totalorder %s2515_s1, %s1386_s25  ;;  %p1390_p9 = scmp.lt.u32.totalorder %s1386_s25, %s2515_s1 }
  0x16   :  { %p1392_p10 = pnand %p1390_p9, %p1387_p8 }
  0x18   :  { %1395 = shalt.err (!%p1392_p10)
}
  0x19   :  { %s1396_s30 = scalar_lea.vmem %s27_s12, 512  ;;  %p1401_p12 = scmp.lt.s32.totalorder %s27_s12, %s27_s12 }
  0x1a   :  { %p1397_p11 = scmp.ne.s32.totalorder %s27_s12, %s1396_s30  ;;  %p1402_p13 = scmp.lt.s32.totalorder %s1396_s30, %s1396_s30 }
  0x1c   :  { %p1403_p0 = por %p1402_p13, %p1401_p12 }
  0x1e   :  { %p1404_p1 = pnand %p1403_p0, %p1397_p11 }
  0x20   :  { %1407 = shalt.err (!%p1404_p1)
}
  0x21   :  { %29 = dma.hbm_to_vmem [thread:$0]  %s2515_s1, 512, %s27_s12, [#allocation6]  }
  0x22   :  { %1430 = dma.done.wait [#allocation3], 512  }
  0x23   :  { %1431 = vsyncadd [#allocation3], 4294966784 }
  0x24   :  { %1432 = dma.done.wait [#allocation6], 512  }
  0x25   :  { %1433 = vsyncadd [#allocation6], 4294966784  ;;  %v59_v0 = vld [vmem:[#allocation2 + $0x8] sm:$0xff]  ;;  %v1482_v1 = vld [vmem:[#allocation2] sm:$0xff]  ;;  %s1438_s4 = smov 2   ;;  %s1439_s1 = smov 126   ;;  %v37_v16 = vlaneseq }
  0x26   :  { %v1484_v2 = vld [vmem:[#allocation2 + $0x10] sm:$0xff]  ;;  %89 = vrot.lane.b32.xlu1 %v59_v0, %s1438_s4  ;;  %87 = vrot.lane.b32.xlu0 %v1482_v1, %s1438_s4  ;;  %v66_v4 = vmul.f32 0.5, %v1482_v1  ;;  %v1491_v5 = vld [vmem:[#allocation2 + $0x18] sm:$0xff]  ;;  %v67_v7 = vmul.f32 0.5, %v59_v0  ;;  %v1499_v8 = vld [vmem:[#allocation5 + $0x8] sm:$0xff]  ;;  %s1440_s5 = smov 127  }
  0x27   :  { %v1488_v3 = vmul.f32 0.5, %v1484_v2  ;;  %v69_v6 = vmul.f32 0.5, %v1491_v5  ;;  %v1501_v9 = vld [vmem:[#allocation5] sm:$0xff]  ;;  %v1506_v10 = vmul.f32 0.5, %v1499_v8  ;;  %v1511_v12 = vld [vmem:[#allocation5 + $0x18] sm:$0xff]  ;;  %v1513_v13 = vld [vmem:[#allocation5 + $0x10] sm:$0xff] }
  0x28   :  { %v1509_v11 = vmul.f32 0.5, %v1501_v9  ;;  %v1520_v14 = vmul.f32 0.5, %v1511_v12  ;;  %v1523_v15 = vmul.f32 0.5, %v1513_v13  ;;  %v1534_v17 = vand.u32 127, %v37_v16  ;;  %s1442_s6 = smov [#allocation7]  }
  0x29   :  { %s931_s7 = sshll.u32 %s1442_s6, 4  ;;  %s932_s7 = int_to_ptr.vmem [resolvable:$true] %s931_s7 }
  0x2a   :  { %74 = vrot.lane.b32.xlu1 %v1488_v3, %s1439_s1  ;;  %70 = vrot.lane.b32.xlu0 %v66_v4, %s1439_s1  ;;  %v1537_v20 = vadd.s32 128, %v1534_v17  ;;  %vm95_vm0 = vcmp.lt.s32.totalorder %v1534_v17, 2  ;;  %v1541_v23 = vadd.s32 384, %v1534_v17  ;;  %vm78_vm1 = vcmp.lt.s32.totalorder %v1534_v17, 126  ;;  %s1408_s8 = scalar_lea.vmem %s932_s7, 128  ;;  %p1413_p3 = scmp.lt.s32.totalorder %s932_s7, %s932_s7 }
  0x2b   :  { %v1549_v29 = vadd.s32 256, %v1534_v17  ;;  %v42_v32 = vand.u32 2, %v1534_v17  ;;  %p1409_p2 = scmp.ne.s32.totalorder %s932_s7, %s1408_s8  ;;  %p1414_p4 = scmp.lt.s32.totalorder %s1408_s8, %s1408_s8 }
  0x2c   :  { %v43_v24 = vand.u32 2, %v1537_v20  ;;  %v45_v28 = vand.u32 2, %v1541_v23 }
  0x2d   :  { %v44_v41 = vand.u32 2, %v1549_v29  ;;  %vm1579_vm4 = vcmp.eq.s32.totalorder %v42_v32, 0  ;;  %p1415_p5 = por %p1414_p4, %p1413_p3 }
  0x2e   :  { %76 = vrot.lane.b32.xlu1 %v69_v6, %s1439_s1  ;;  %72 = vrot.lane.b32.xlu0 %v67_v7, %s1439_s1  ;;  %vm1553_vm2 = vcmp.eq.s32.totalorder %v43_v24, 0  ;;  %vm1566_vm3 = vcmp.eq.s32.totalorder %v45_v28, 0 }
  0x2f   :  { %vm1600_vm5 = vcmp.eq.s32.totalorder %v44_v41, 0  ;;  %p1416_p6 = pnand %p1415_p5, %p1409_p2 }
  0x32   :  { %93 = vrot.lane.b32.xlu1 %v1491_v5, %s1438_s4  ;;  %91 = vrot.lane.b32.xlu0 %v1484_v2, %s1438_s4 }
  0x36   :  { %122 = vrot.lane.b32.xlu1 %v1506_v10, %s1439_s1  ;;  %120 = vrot.lane.b32.xlu0 %v1509_v11, %s1439_s1 }
  0x3a   :  { %126 = vrot.lane.b32.xlu1 %v1520_v14, %s1439_s1  ;;  %124 = vrot.lane.b32.xlu0 %v1523_v15, %s1439_s1 }
  0x3e   :  { %138 = vrot.lane.b32.xlu1 %v1499_v8, %s1438_s4  ;;  %136 = vrot.lane.b32.xlu0 %v1501_v9, %s1438_s4 }
  0x42   :  { %142 = vrot.lane.b32.xlu1 %v1511_v12, %s1438_s4  ;;  %140 = vrot.lane.b32.xlu0 %v1513_v13, %s1438_s4 }
  0x98   :  { %v90_v18 = vpop.permute.xlu1 %89  ;;  %v88_v19 = vpop.permute.xlu0 %87 }
  0x99   :  { %v98_v25 = vsel %vm95_vm0, %v88_v19, %v90_v18 }
  0x9a   :  { %v101_v33 = vadd.f32 %v98_v25, %v67_v7 }
  0x9c   :  { %v75_v21 = vpop.permute.xlu1 %74  ;;  %v71_v22 = vpop.permute.xlu0 %70 }
  0xa0   :  { %v77_v26 = vpop.permute.xlu1 %76  ;;  %v73_v27 = vpop.permute.xlu0 %72 }
  0xa1   :  { %v80_v30 = vsel %vm78_vm1, %v73_v27, %v75_v21  ;;  %v82_v35 = vsel %vm78_vm1, %v77_v26, %v71_v22  ;;  %v81_v36 = vsel %vm78_vm1, %v71_v22, %v73_v27  ;;  %v79_v50 = vsel %vm78_vm1, %v75_v21, %v77_v26 }
  0xa2   :  { %v84_v34 = vsub.f32 %v59_v0, %v80_v30  ;;  %v86_v46 = vsub.f32 %v1491_v5, %v82_v35  ;;  %v83_v47 = vsub.f32 %v1482_v1, %v81_v36  ;;  %v85_v57 = vsub.f32 %v1484_v2, %v79_v50 }
  0xa4   :  { %v94_v37 = vpop.permute.xlu1 %93  ;;  %v92_v38 = vpop.permute.xlu0 %91  ;;  %v1564_v39 = vsel %vm1553_vm2, %v84_v34, %v101_v33 }
  0xa5   :  { %v99_v42 = vsel %vm95_vm0, %v94_v37, %v88_v19  ;;  %v96_v43 = vsel %vm95_vm0, %v92_v38, %v94_v37  ;;  %v97_v44 = vsel %vm95_vm0, %v90_v18, %v92_v38  ;;  %158 = vrot.lane.b32.xlu1 %v1564_v39, %s1439_s1 }
  0xa6   :  { %v100_v48 = vadd.f32 %v99_v42, %v66_v4  ;;  %v103_v49 = vadd.f32 %v96_v43, %v69_v6  ;;  %v102_v51 = vadd.f32 %v97_v44, %v1488_v3 }
  0xa8   :  { %v123_v52 = vpop.permute.xlu1 %122  ;;  %v121_v53 = vpop.permute.xlu0 %120  ;;  %v1590_v54 = vsel %vm1566_vm3, %v86_v46, %v103_v49  ;;  %v1594_v55 = vsel %vm1579_vm4, %v83_v47, %v100_v48  ;;  %v1607_v60 = vsel %vm1600_vm5, %v85_v57, %v102_v51 }
  0xa9   :  { %162 = vrot.lane.b32.xlu1 %v1590_v54, %s1439_s1  ;;  %156 = vrot.lane.b32.xlu0 %v1594_v55, %s1439_s1  ;;  %v130_v1 = vsel %vm78_vm1, %v121_v53, %v123_v52 }
  0xaa   :  { %v132_v18 = vsub.f32 %v1501_v9, %v130_v1  ;;  %v1751_v1 = vshrl.u32 %v37_v16, 7 }
  0xac   :  { %v127_v58 = vpop.permute.xlu1 %126  ;;  %v125_v59 = vpop.permute.xlu0 %124 }
  0xad   :  { %160 = vrot.lane.b32.xlu0 %v1607_v60, %s1439_s1  ;;  %v129_v61 = vsel %vm78_vm1, %v123_v52, %v125_v59  ;;  %v131_v4 = vsel %vm78_vm1, %v127_v58, %v121_v53  ;;  %v128_v22 = vsel %vm78_vm1, %v125_v59, %v127_v58 }
  0xae   :  { %v133_v2 = vsub.f32 %v1499_v8, %v129_v61  ;;  %v134_v30 = vsub.f32 %v1513_v13, %v128_v22 }
  0xb0   :  { %v139_v62 = vpop.permute.xlu1 %138  ;;  %v137_v63 = vpop.permute.xlu0 %136 }
  0xb1   :  { %v146_v0 = vsel %vm95_vm0, %v137_v63, %v139_v62 }
  0xb2   :  { %v149_v3 = vadd.f32 %v146_v0, %v1506_v10  ;;  %v135_v10 = vsub.f32 %v1511_v12, %v131_v4 }
  0xb4   :  { %v143_v5 = vpop.permute.xlu1 %142  ;;  %v141_v6 = vpop.permute.xlu0 %140  ;;  %v1623_v7 = vsel %vm1553_vm2, %v133_v2, %v149_v3 }
  0xb5   :  { %v147_v19 = vsel %vm95_vm0, %v143_v5, %v137_v63  ;;  %v144_v21 = vsel %vm95_vm0, %v141_v6, %v143_v5  ;;  %v145_v8 = vsel %vm95_vm0, %v139_v62, %v141_v6  ;;  %191 = vrot.lane.b32.xlu1 %v1623_v7, %s1439_s1  ;;  %v222_v26 = vmax.f32 %v1564_v39, %v1623_v7 }
  0xb6   :  { %v148_v24 = vadd.f32 %v147_v19, %v1509_v11  ;;  %v151_v9 = vadd.f32 %v144_v21, %v1520_v14  ;;  %v150_v25 = vadd.f32 %v145_v8, %v1523_v15  ;;  %v226_v27 = vmin.f32 %v1564_v39, %v1623_v7 }
  0xb7   :  { %v1760_v5 = vmul.u32 4, %v1534_v17  ;;  %v382_v21 = vadd.s32 128, %v1751_v1  ;;  %v383_v8 = vadd.s32 136, %v1751_v1 }
  0xb8   :  { %v1646_v28 = vsel %vm1566_vm3, %v135_v10, %v151_v9  ;;  %v152_v12 = vsel %vm1579_vm4, %v132_v18, %v148_v24  ;;  %v1656_v11 = vsel %vm1553_vm2, %v222_v26, %v226_v27  ;;  %v154_v14 = vsel %vm1600_vm5, %v134_v30, %v150_v25 }
  0xb9   :  { %195 = vrot.lane.b32.xlu1 %v1646_v28, %s1439_s1  ;;  %189 = vrot.lane.b32.xlu0 %v152_v12, %s1439_s1  ;;  %v224_v15 = vmax.f32 %v1590_v54, %v1646_v28  ;;  %v228_v32 = vmin.f32 %v1590_v54, %v1646_v28  ;;  %v221_v13 = vmax.f32 %v1594_v55, %v152_v12  ;;  %v367_v25 = vadd.s32 8, %v1751_v1 }
  0xba   :  { %v225_v33 = vmin.f32 %v1594_v55, %v152_v12  ;;  %v223_v36 = vmax.f32 %v1607_v60, %v154_v14  ;;  %v227_v37 = vmin.f32 %v1607_v60, %v154_v14  ;;  %v1679_v38 = vsel %vm1553_vm2, %v226_v27, %v222_v26 }
  0xbb   :  { %v232_v34 = vsel %vm1566_vm3, %v224_v15, %v228_v32  ;;  %v1691_v42 = vsel %vm1566_vm3, %v228_v32, %v224_v15  ;;  %vm447_vm6 = vcmp.eq.s32.totalorder %v382_v21, %v1760_v5  ;;  %vm448_vm7 = vcmp.eq.s32.totalorder %v383_v8, %v1760_v5 }
  0xbc   :  { %v229_v35 = vsel %vm1579_vm4, %v221_v13, %v225_v33  ;;  %v1683_v41 = vsel %vm1600_vm5, %v223_v36, %v227_v37  ;;  %v1695_v43 = vsel %vm1579_vm4, %v225_v33, %v221_v13  ;;  %v1703_v31 = vsel %vm1600_vm5, %v227_v37, %v223_v36  ;;  %vm1788_vm8 = vmpackc.low %vm448_vm7, %vm447_vm6 }
  0xbd   :  { %239 = vrot.lane.b32.xlu1 %v1656_v11, %s1439_s1  ;;  %193 = vrot.lane.b32.xlu0 %v154_v14, %s1439_s1  ;;  %v2590_v30 = vmov 0  ;;  %vm431_vm9 = vcmp.eq.s32.totalorder %v1751_v1, %v1760_v5  ;;  %vm432_vm10 = vcmp.eq.s32.totalorder %v367_v25, %v1760_v5  ;;  %v385_v15 = vadd.s32 152, %v1751_v1 }
  0xbe   :  { %v2591_v30 = vsel %vm1788_vm8, 4294967295, %v2590_v30  ;;  %v414_v32 = vadd.s32 384, %v1751_v1  ;;  %vm1805_vm11 = vmpackc.low %vm432_vm10, %vm431_vm9  ;;  %v415_v37 = vadd.s32 392, %v1751_v1  ;;  %v2604_v21 = vmov 0 }
  0xbf   :  { %2592 = vst [vmem:[#allocation11_spill] sm:$0xff] %v2591_v30  ;;  %vm450_vm13 = vcmp.eq.s32.totalorder %v385_v15, %v1760_v5  ;;  %v2606_v8 = vmov 0  ;;  %v389_v25 = vadd.s32 184, %v1751_v1  ;;  %v402_v15 = vadd.s32 288, %v1751_v1 }
  0xc0   :  { %vm479_vm15 = vcmp.eq.s32.totalorder %v414_v32, %v1760_v5  ;;  %vm480_vm0 = vcmp.eq.s32.totalorder %v415_v37, %v1760_v5  ;;  %v2610_v32 = vmov 0  ;;  %v390_v37 = vadd.s32 192, %v1751_v1 }
  0xc1   :  { %243 = vrot.lane.b32.xlu1 %v232_v34, %s1439_s1  ;;  %237 = vrot.lane.b32.xlu0 %v229_v35, %s1439_s1  ;;  %vm1843_vm3 = vmpackc.low %vm480_vm0, %vm479_vm15 }
  0xc5   :  { %275 = vrot.lane.b32.xlu1 %v1679_v38, %s1439_s1  ;;  %241 = vrot.lane.b32.xlu0 %v1683_v41, %s1439_s1 }
  0xc9   :  { %279 = vrot.lane.b32.xlu1 %v1691_v42, %s1439_s1  ;;  %273 = vrot.lane.b32.xlu0 %v1695_v43, %s1439_s1 }
  0xcd   :  { %277 = vrot.lane.b32.xlu0 %v1703_v31, %s1439_s1 }
 0x117   :  { %v159_v40 = vpop.permute.xlu1 %158 }
 0x11b   :  { %v157_v44 = vpop.permute.xlu0 %156  ;;  %v163_v47 = vpop.permute.xlu1 %162 }
 0x11c   :  { %v166_v45 = vsel %vm78_vm1, %v157_v44, %v159_v40  ;;  %v167_v53 = vsel %vm78_vm1, %v163_v47, %v157_v44 }
 0x11d   :  { %v1710_v46 = vsub.f32 %v166_v45, %v1594_v55  ;;  %v1731_v55 = vsub.f32 %v167_v53, %v1590_v54 }
 0x11f   :  { %v161_v48 = vpop.permute.xlu0 %160  ;;  %172 = vrot.lane.b32.xlu0 %v1710_v46, %s1440_s5 }
 0x120   :  { %v164_v49 = vsel %vm78_vm1, %v161_v48, %v163_v47  ;;  %v165_v50 = vsel %vm78_vm1, %v159_v40, %v161_v48  ;;  %v2595_v48 = vmov 0 }
 0x121   :  { %v1719_v51 = vsub.f32 %v165_v50, %v1564_v39  ;;  %v1722_v52 = vsub.f32 %v164_v49, %v1607_v60  ;;  %v369_v49 = vadd.s32 24, %v1751_v1 }
 0x123   :  { %174 = vrot.lane.b32.xlu1 %v1719_v51, %s1440_s5  ;;  %176 = vrot.lane.b32.xlu0 %v1722_v52, %s1440_s5  ;;  %vm434_vm4 = vcmp.eq.s32.totalorder %v369_v49, %v1760_v5  ;;  %v375_v49 = vadd.s32 72, %v1751_v1 }
 0x127   :  { %v192_v56 = vpop.permute.xlu1 %191  ;;  %178 = vrot.lane.b32.xlu1 %v1731_v55, %s1440_s5 }
 0x12b   :  { %v196_v39 = vpop.permute.xlu1 %195  ;;  %v190_v57 = vpop.permute.xlu0 %189 }
 0x12c   :  { %v199_v58 = vsel %vm78_vm1, %v190_v57, %v192_v56  ;;  %v200_v2 = vsel %vm78_vm1, %v196_v39, %v190_v57  ;;  %v386_v57 = vadd.s32 160, %v1751_v1 }
 0x12d   :  { %v1737_v59 = vsub.f32 %v199_v58, %v152_v12 }
 0x12e   :  { %vm451_vm9 = vcmp.eq.s32.totalorder %v386_v57, %v1760_v5  ;;  %v2620_v57 = vmov 0 }
 0x12f   :  { %v240_v60 = vpop.permute.xlu1 %239  ;;  %v194_v61 = vpop.permute.xlu0 %193  ;;  %205 = vrot.lane.b32.xlu0 %v1737_v59, %s1440_s5 }
 0x130   :  { %v197_v54 = vsel %vm78_vm1, %v194_v61, %v196_v39  ;;  %v198_v62 = vsel %vm78_vm1, %v192_v56, %v194_v61  ;;  %v2597_v39 = vmov 0  ;;  %v2600_v61 = vmov 0 }
 0x131   :  { %v1746_v63 = vsub.f32 %v198_v62, %v1623_v7  ;;  %v1748_v0 = vsub.f32 %v197_v54, %v154_v14  ;;  %v1767_v7 = vsub.f32 %v200_v2, %v1646_v28  ;;  %v2559_v14 = vmov 1.0|1.0  }
 0x132   :  { %1209 = vmatprep.subr.msk.bf16.mxu0 %vm1788_vm8, %v2559_v14  ;;  %v2598_v39 = vsel %vm1843_vm3, 4294967295, %v2597_v39  ;;  %1231 = vmatprep.subr.msk.bf16.mxu1 %vm1843_vm3, %v2559_v14  ;;  %v2602_v2 = vmov 0 }
 0x133   :  { %v244_v3 = vpop.permute.xlu1 %243  ;;  %207 = vrot.lane.b32.xlu1 %v1746_v63, %s1440_s5  ;;  %209 = vrot.lane.b32.xlu0 %v1748_v0, %s1440_s5  ;;  %v238_v4 = vpop.permute.xlu0 %237  ;;  %2599 = vst [vmem:[#allocation12_spill] sm:$0xff] %v2598_v39 }
 0x134   :  { %v247_v6 = vsel %vm78_vm1, %v238_v4, %v240_v60  ;;  %v248_v16 = vsel %vm78_vm1, %v244_v3, %v238_v4  ;;  %1210 = vmatpush3.bf16.msk.msra.mxu0 %vm1805_vm11, %v2559_v14  ;;  %v370_v4 = vadd.s32 32, %v1751_v1 }
 0x135   :  { %v249_v18 = vsub.f32 %v247_v6, %v229_v35  ;;  %v252_v19 = vsub.f32 %v248_v16, %v232_v34  ;;  %v371_v6 = vadd.s32 40, %v1751_v1 }
 0x136   :  { %vm435_vm0 = vcmp.eq.s32.totalorder %v370_v4, %v1760_v5  ;;  %v377_v4 = vadd.s32 88, %v1751_v1 }
 0x137   :  { %v1771_v10 = vmax.f32 %v249_v18, 0.0  ;;  %v1773_v22 = vmax.f32 %v252_v19, 0.0  ;;  %v276_v24 = vpop.permute.xlu1 %275  ;;  %211 = vrot.lane.b32.xlu1 %v1767_v7, %s1440_s5  ;;  %v242_v9 = vpop.permute.xlu0 %241  ;;  %v400_v19 = vadd.s32 272, %v1751_v1 }
 0x138   :  { %v245_v26 = vsel %vm78_vm1, %v242_v9, %v244_v3  ;;  %v246_v27 = vsel %vm78_vm1, %v240_v60, %v242_v9  ;;  %v387_v3 = vadd.s32 168, %v1751_v1  ;;  %v388_v9 = vadd.s32 176, %v1751_v1 }
 0x139   :  { %v250_v28 = vsub.f32 %v246_v27, %v1656_v11  ;;  %v251_v12 = vsub.f32 %v245_v26, %v1683_v41  ;;  %257 = vrot.lane.b32.xlu0 %v1771_v10, %s1440_s5  ;;  %v384_v11 = vadd.s32 144, %v1751_v1  ;;  %v368_v41 = vadd.s32 16, %v1751_v1 }
 0x13a   :  { %vm452_vm10 = vcmp.eq.s32.totalorder %v387_v3, %v1760_v5  ;;  %v2608_v26 = vmov 0  ;;  %v418_v27 = vadd.s32 416, %v1751_v1  ;;  %v422_v3 = vadd.s32 448, %v1751_v1 }
 0x13b   :  { %v1801_v13 = vmax.f32 %v250_v28, 0.0  ;;  %v1803_v33 = vmax.f32 %v251_v12, 0.0  ;;  %v280_v34 = vpop.permute.xlu1 %279  ;;  %v274_v35 = vpop.permute.xlu0 %273  ;;  %vm449_vm12 = vcmp.eq.s32.totalorder %v384_v11, %v1760_v5  ;;  %vm433_vm2 = vcmp.eq.s32.totalorder %v368_v41, %v1760_v5 }
 0x13c   :  { %v283_v40 = vsel %vm78_vm1, %v274_v35, %v276_v24  ;;  %v284_v44 = vsel %vm78_vm1, %v280_v34, %v274_v35  ;;  %vm1826_vm14 = vmpackc.low %vm450_vm13, %vm449_vm12  ;;  %v419_v28 = vadd.s32 424, %v1751_v1  ;;  %v372_v12 = vadd.s32 48, %v1751_v1 }
 0x13d   :  { %v285_v45 = vsub.f32 %v283_v40, %v1695_v43  ;;  %v288_v47 = vsub.f32 %v284_v44, %v1691_v42  ;;  %259 = vrot.lane.b32.xlu1 %v1801_v13, %s1440_s5  ;;  %261 = vrot.lane.b32.xlu0 %v1803_v33, %s1440_s5  ;;  %v2596_v48 = vsel %vm1826_vm14, 4294967295, %v2595_v48  ;;  %v398_v42 = vadd.s32 256, %v1751_v1  ;;  %vm1856_vm5 = vmpackc.low %vm434_vm4, %vm433_vm2 }
 0x13e   :  { %1211 = vmatprep.subr.msk.bf16.mxu0 %vm1826_vm14, %v2559_v14  ;;  %v399_v43 = vadd.s32 264, %v1751_v1  ;;  %v2601_v61 = vsel %vm1856_vm5, 4294967295, %v2600_v61  ;;  %vm1890_vm12 = vmpackc.low %vm452_vm10, %vm451_vm9  ;;  %vm436_vm2 = vcmp.eq.s32.totalorder %v371_v6, %v1760_v5  ;;  %v373_v11 = vadd.s32 56, %v1751_v1 }
 0x13f   :  { %v1839_v50 = vmax.f32 %v285_v45, 0.0  ;;  %v1841_v53 = vmax.f32 %v288_v47, 0.0  ;;  %v278_v56 = vpop.permute.xlu0 %277  ;;  %vm463_vm6 = vcmp.eq.s32.totalorder %v398_v42, %v1760_v5  ;;  %1212 = vmatpush3.bf16.msk.msra.mxu0 %vm1856_vm5, %v2559_v14  ;;  %v2605_v21 = vsel %vm1890_vm12, 4294967295, %v2604_v21 }
 0x140   :  { %v281_v58 = vsel %vm78_vm1, %v278_v56, %v280_v34  ;;  %v282_v60 = vsel %vm78_vm1, %v276_v24, %v278_v56  ;;  %vm464_vm7 = vcmp.eq.s32.totalorder %v399_v43, %v1760_v5  ;;  %v401_v24 = vadd.s32 280, %v1751_v1  ;;  %1213 = vmatprep.subr.msk.bf16.mxu0 %vm1890_vm12, %v2559_v14 }
 0x141   :  { %v286_v54 = vsub.f32 %v282_v60, %v1679_v38  ;;  %v287_v62 = vsub.f32 %v281_v58, %v1703_v31  ;;  %263 = vrot.lane.b32.xlu1 %v1773_v22, %s1440_s5  ;;  %293 = vrot.lane.b32.xlu0 %v1839_v50, %s1440_s5  ;;  %vm1868_vm1 = vmpackc.low %vm464_vm7, %vm463_vm6  ;;  %v416_v38 = vadd.s32 400, %v1751_v1  ;;  %v417_v31 = vadd.s32 408, %v1751_v1 }
 0x142   :  { %v2603_v2 = vsel %vm1868_vm1, 4294967295, %v2602_v2  ;;  %1232 = vmatpush3.bf16.msk.msra.mxu1 %vm1868_vm1, %v2559_v14  ;;  %vm465_vm6 = vcmp.eq.s32.totalorder %v400_v19, %v1760_v5  ;;  %vm1916_vm7 = vmpackc.low %vm436_vm2, %vm435_vm0  ;;  %vm466_vm9 = vcmp.eq.s32.totalorder %v401_v24, %v1760_v5  ;;  %vm453_vm10 = vcmp.eq.s32.totalorder %v388_v9, %v1760_v5 }
 0x143   :  { %v1884_v16 = vmax.f32 %v286_v54, 0.0  ;;  %v1886_v18 = vmax.f32 %v287_v62, 0.0  ;;  %vm481_vm13 = vcmp.eq.s32.totalorder %v416_v38, %v1760_v5  ;;  %vm482_vm15 = vcmp.eq.s32.totalorder %v417_v31, %v1760_v5  ;;  %1214 = vmatpush3.bf16.msk.msra.mxu0 %vm1916_vm7, %v2559_v14 }
 0x144   :  { %vm1902_vm4 = vmpackc.low %vm482_vm15, %vm481_vm13  ;;  %v2609_v26 = vsel %vm1916_vm7, 4294967295, %v2608_v26  ;;  %vm454_vm13 = vcmp.eq.s32.totalorder %v389_v25, %v1760_v5  ;;  %vm483_vm0 = vcmp.eq.s32.totalorder %v418_v27, %v1760_v5  ;;  %vm484_vm2 = vcmp.eq.s32.totalorder %v419_v28, %v1760_v5 }
 0x145   :  { %295 = vrot.lane.b32.xlu1 %v1884_v16, %s1440_s5  ;;  %297 = vrot.lane.b32.xlu0 %v1886_v18, %s1440_s5  ;;  %v2607_v8 = vsel %vm1902_vm4, 4294967295, %v2606_v8  ;;  %vm1933_vm15 = vmpackc.low %vm466_vm9, %vm465_vm6  ;;  %vm437_vm7 = vcmp.eq.s32.totalorder %v372_v12, %v1760_v5  ;;  %v2612_v34 = vmov 0  ;;  %v403_v35 = vadd.s32 296, %v1751_v1 }
 0x146   :  { %1233 = vmatprep.subr.msk.bf16.mxu1 %vm1902_vm4, %v2559_v14  ;;  %v2611_v32 = vsel %vm1933_vm15, 4294967295, %v2610_v32  ;;  %vm438_vm4 = vcmp.eq.s32.totalorder %v373_v11, %v1760_v5  ;;  %vm1946_vm12 = vmpackc.low %vm454_vm13, %vm453_vm10  ;;  %vm467_vm6 = vcmp.eq.s32.totalorder %v402_v15, %v1760_v5  ;;  %v391_v41 = vadd.s32 200, %v1751_v1 }
 0x147   :  { %1234 = vmatpush3.bf16.msk.msra.mxu1 %vm1933_vm15, %v2559_v14  ;;  %v2613_v34 = vsel %vm1946_vm12, 4294967295, %v2612_v34  ;;  %1215 = vmatprep.subr.msk.bf16.mxu0 %vm1946_vm12, %v2559_v14  ;;  %vm1957_vm9 = vmpackc.low %vm484_vm2, %vm483_vm0  ;;  %v2614_v40 = vmov 0  ;;  %v420_v44 = vadd.s32 432, %v1751_v1  ;;  %v421_v45 = vadd.s32 440, %v1751_v1 }
 0x148   :  { %v2615_v40 = vsel %vm1957_vm9, 4294967295, %v2614_v40  ;;  %v374_v47 = vadd.s32 64, %v1751_v1  ;;  %1235 = vmatprep.subr.msk.bf16.mxu1 %vm1957_vm9, %v2559_v14  ;;  %vm1972_vm10 = vmpackc.low %vm438_vm4, %vm437_vm7  ;;  %v2616_v42 = vmov 0  ;;  %vm468_vm13 = vcmp.eq.s32.totalorder %v403_v35, %v1760_v5 }
 0x149   :  { %299 = vrot.lane.b32.xlu1 %v1841_v53, %s1440_s5  ;;  %v2617_v42 = vsel %vm1972_vm10, 4294967295, %v2616_v42  ;;  %vm455_vm0 = vcmp.eq.s32.totalorder %v390_v37, %v1760_v5  ;;  %vm456_vm2 = vcmp.eq.s32.totalorder %v391_v41, %v1760_v5  ;;  %v404_v43 = vadd.s32 304, %v1751_v1  ;;  %1216 = vmatpush3.bf16.msk.msra.mxu0 %vm1972_vm10, %v2559_v14  ;;  %vm1985_vm9 = vmpackc.low %vm468_vm13, %vm467_vm6 }
 0x14a   :  { %v2618_v56 = vmov 0  ;;  %vm485_vm4 = vcmp.eq.s32.totalorder %v420_v44, %v1760_v5  ;;  %vm486_vm7 = vcmp.eq.s32.totalorder %v421_v45, %v1760_v5  ;;  %vm439_vm12 = vcmp.eq.s32.totalorder %v374_v47, %v1760_v5  ;;  %vm1996_vm1 = vmpackc.low %vm456_vm2, %vm455_vm0 }
 0x14b   :  { %v2619_v56 = vsel %vm1985_vm9, 4294967295, %v2618_v56  ;;  %vm440_vm15 = vcmp.eq.s32.totalorder %v375_v49, %v1760_v5  ;;  %1236 = vmatpush3.bf16.msk.msra.mxu1 %vm1985_vm9, %v2559_v14  ;;  %v2621_v57 = vsel %vm1996_vm1, 4294967295, %v2620_v57  ;;  %v405_v58 = vadd.s32 312, %v1751_v1  ;;  %1217 = vmatprep.subr.msk.bf16.mxu0 %vm1996_vm1, %v2559_v14  ;;  %vm2007_vm13 = vmpackc.low %vm486_vm7, %vm485_vm4 }
 0x14c   :  { %vm469_vm6 = vcmp.eq.s32.totalorder %v404_v43, %v1760_v5  ;;  %v392_v60 = vadd.s32 208, %v1751_v1  ;;  %v393_v54 = vadd.s32 216, %v1751_v1  ;;  %v2622_v62 = vmov 0  ;;  %1237 = vmatprep.subr.msk.bf16.mxu1 %vm2007_vm13, %v2559_v14  ;;  %vm2020_vm0 = vmpackc.low %vm440_vm15, %vm439_vm12 }
 0x14d   :  { %v2623_v62 = vsel %vm2007_vm13, 4294967295, %v2622_v62  ;;  %v423_v38 = vadd.s32 456, %v1751_v1  ;;  %v376_v31 = vadd.s32 80, %v1751_v1  ;;  %v2624_v6 = vmov 0  ;;  %1218 = vmatpush3.bf16.msk.msra.mxu0 %vm2020_vm0, %v2559_v14 }
 0x14e   :  { %v2625_v6 = vsel %vm2020_vm0, 4294967295, %v2624_v6  ;;  %vm470_vm2 = vcmp.eq.s32.totalorder %v405_v58, %v1760_v5  ;;  %vm457_vm4 = vcmp.eq.s32.totalorder %v392_v60, %v1760_v5  ;;  %vm458_vm7 = vcmp.eq.s32.totalorder %v393_v54, %v1760_v5 }
 0x14f   :  { %v406_v19 = vadd.s32 320, %v1751_v1  ;;  %vm2033_vm13 = vmpackc.low %vm470_vm2, %vm469_vm6  ;;  %v2626_v24 = vmov 0  ;;  %vm487_vm12 = vcmp.eq.s32.totalorder %v422_v3, %v1760_v5  ;;  %vm488_vm15 = vcmp.eq.s32.totalorder %v423_v38, %v1760_v5 }
 0x150   :  { %v2627_v24 = vsel %vm2033_vm13, 4294967295, %v2626_v24  ;;  %vm441_vm1 = vcmp.eq.s32.totalorder %v376_v31, %v1760_v5  ;;  %vm442_vm9 = vcmp.eq.s32.totalorder %v377_v4, %v1760_v5  ;;  %1238 = vmatpush3.bf16.msk.msra.mxu1 %vm2033_vm13, %v2559_v14  ;;  %vm2044_vm10 = vmpackc.low %vm458_vm7, %vm457_vm4  ;;  %v2628_v9 = vmov 0 }
 0x151   :  { %v2629_v9 = vsel %vm2044_vm10, 4294967295, %v2628_v9  ;;  %v407_v25 = vadd.s32 328, %v1751_v1  ;;  %vm471_vm6 = vcmp.eq.s32.totalorder %v406_v19, %v1760_v5  ;;  %v394_v27 = vadd.s32 224, %v1751_v1  ;;  %1219 = vmatprep.subr.msk.bf16.mxu0 %vm2044_vm10, %v2559_v14  ;;  %vm2055_vm2 = vmpackc.low %vm488_vm15, %vm487_vm12 }
 0x152   :  { %v395_v28 = vadd.s32 232, %v1751_v1  ;;  %v2630_v12 = vmov 0  ;;  %v424_v11 = vadd.s32 464, %v1751_v1  ;;  %v425_v15 = vadd.s32 472, %v1751_v1  ;;  %1239 = vmatprep.subr.msk.bf16.mxu1 %vm2055_vm2, %v2559_v14  ;;  %vm2068_vm4 = vmpackc.low %vm442_vm9, %vm441_vm1 }
 0x153   :  { %v2631_v12 = vsel %vm2055_vm2, 4294967295, %v2630_v12  ;;  %v378_v35 = vadd.s32 96, %v1751_v1  ;;  %v379_v37 = vadd.s32 104, %v1751_v1  ;;  %v2632_v41 = vmov 0  ;;  %1220 = vmatpush3.bf16.msk.msra.mxu0 %vm2068_vm4, %v2559_v14 }
 0x154   :  { %v2633_v41 = vsel %vm2068_vm4, 4294967295, %v2632_v41  ;;  %vm472_vm7 = vcmp.eq.s32.totalorder %v407_v25, %v1760_v5  ;;  %vm459_vm12 = vcmp.eq.s32.totalorder %v394_v27, %v1760_v5  ;;  %vm460_vm15 = vcmp.eq.s32.totalorder %v395_v28, %v1760_v5 }
 0x155   :  { %v408_v44 = vadd.s32 336, %v1751_v1  ;;  %vm2081_vm2 = vmpackc.low %vm472_vm7, %vm471_vm6  ;;  %v2634_v45 = vmov 0  ;;  %vm489_vm1 = vcmp.eq.s32.totalorder %v424_v11, %v1760_v5  ;;  %vm490_vm9 = vcmp.eq.s32.totalorder %v425_v15, %v1760_v5 }
 0x156   :  { %v2635_v45 = vsel %vm2081_vm2, 4294967295, %v2634_v45  ;;  %vm443_vm10 = vcmp.eq.s32.totalorder %v378_v35, %v1760_v5  ;;  %vm444_vm13 = vcmp.eq.s32.totalorder %v379_v37, %v1760_v5  ;;  %1240 = vmatpush3.bf16.msk.msra.mxu1 %vm2081_vm2, %v2559_v14  ;;  %vm2092_vm0 = vmpackc.low %vm460_vm15, %vm459_vm12  ;;  %v2636_v47 = vmov 0 }
 0x157   :  { %v2637_v47 = vsel %vm2092_vm0, 4294967295, %v2636_v47  ;;  %v409_v49 = vadd.s32 344, %v1751_v1  ;;  %vm473_vm6 = vcmp.eq.s32.totalorder %v408_v44, %v1760_v5  ;;  %v396_v43 = vadd.s32 240, %v1751_v1  ;;  %1221 = vmatprep.subr.msk.bf16.mxu0 %vm2092_vm0, %v2559_v14  ;;  %vm2103_vm7 = vmpackc.low %vm490_vm9, %vm489_vm1 }
 0x158   :  { %v397_v58 = vadd.s32 248, %v1751_v1  ;;  %v2638_v60 = vmov 0  ;;  %v426_v54 = vadd.s32 480, %v1751_v1  ;;  %v427_v3 = vadd.s32 488, %v1751_v1  ;;  %1241 = vmatprep.subr.msk.bf16.mxu1 %vm2103_vm7, %v2559_v14  ;;  %vm2116_vm12 = vmpackc.low %vm444_vm13, %vm443_vm10 }
 0x159   :  { %v2639_v60 = vsel %vm2103_vm7, 4294967295, %v2638_v60  ;;  %v380_v38 = vadd.s32 112, %v1751_v1  ;;  %v381_v31 = vadd.s32 120, %v1751_v1  ;;  %vm474_vm15 = vcmp.eq.s32.totalorder %v409_v49, %v1760_v5  ;;  %1222 = vmatpush3.bf16.msk.msra.mxu0 %vm2116_vm12, %v2559_v14 }
 0x15a   :  { %vm461_vm1 = vcmp.eq.s32.totalorder %v396_v43, %v1760_v5  ;;  %vm462_vm9 = vcmp.eq.s32.totalorder %v397_v58, %v1760_v5  ;;  %v410_v19 = vadd.s32 352, %v1751_v1  ;;  %vm2129_vm7 = vmpackc.low %vm474_vm15, %vm473_vm6  ;;  %v2642_v25 = vmov 0 }
 0x15b   :  { %v2643_v25 = vsel %vm2129_vm7, 4294967295, %v2642_v25  ;;  %vm491_vm10 = vcmp.eq.s32.totalorder %v426_v54, %v1760_v5  ;;  %vm492_vm13 = vcmp.eq.s32.totalorder %v427_v3, %v1760_v5  ;;  %vm445_vm0 = vcmp.eq.s32.totalorder %v380_v38, %v1760_v5  ;;  %1242 = vmatpush3.bf16.msk.msra.mxu1 %vm2129_vm7, %v2559_v14  ;;  %vm2140_vm4 = vmpackc.low %vm462_vm9, %vm461_vm1 }
 0x15c   :  { %2644 = vst [vmem:[#allocation13_spill] sm:$0xff] %v2643_v25  ;;  %vm446_vm2 = vcmp.eq.s32.totalorder %v381_v31, %v1760_v5  ;;  %v2645_v27 = vmov 0  ;;  %v411_v28 = vadd.s32 360, %v1751_v1  ;;  %vm475_vm6 = vcmp.eq.s32.totalorder %v410_v19, %v1760_v5  ;;  %1223 = vmatprep.subr.msk.bf16.mxu0 %vm2140_vm4, %v2559_v14  ;;  %vm2150_vm15 = vmpackc.low %vm492_vm13, %vm491_vm10 }
 0x15d   :  { %v2646_v27 = vsel %vm2140_vm4, 4294967295, %v2645_v27  ;;  %v428_v11 = vadd.s32 496, %v1751_v1  ;;  %v2648_v15 = vmov 0  ;;  %v429_v35 = vadd.s32 504, %v1751_v1  ;;  %1243 = vmatprep.subr.msk.bf16.mxu1 %vm2150_vm15, %v2559_v14  ;;  %vm2160_vm1 = vmpackc.low %vm446_vm2, %vm445_vm0 }
 0x15e   :  { %2647 = vst [vmem:[#allocation14_spill] sm:$0xff] %v2646_v27  ;;  %v2649_v15 = vsel %vm2150_vm15, 4294967295, %v2648_v15  ;;  %v412_v37 = vadd.s32 368, %v1751_v1  ;;  %v413_v44 = vadd.s32 376, %v1751_v1  ;;  %v2651_v49 = vmov 0  ;;  %1224 = vmatpush3.bf16.msk.msra.mxu0 %vm2160_vm1, %v2559_v14 }
 0x15f   :  { %2650 = vst [vmem:[#allocation15_spill] sm:$0xff] %v2649_v15  ;;  %v2652_v49 = vsel %vm2160_vm1, 4294967295, %v2651_v49  ;;  %vm476_vm9 = vcmp.eq.s32.totalorder %v411_v28, %v1760_v5  ;;  %vm493_vm10 = vcmp.eq.s32.totalorder %v428_v11, %v1760_v5  ;;  %v2654_v43 = vmov 0  ;;  %1253 = vmatprep.subr.msk.bf16.mxu0 %vm1788_vm8, %v2559_v14 }
 0x160   :  { %2653 = vst [vmem:[#allocation16_spill] sm:$0xff] %v2652_v49  ;;  %vm2169_vm13 = vmpackc.low %vm476_vm9, %vm475_vm6  ;;  %vm494_vm4 = vcmp.eq.s32.totalorder %v429_v35, %v1760_v5  ;;  %vm477_vm15 = vcmp.eq.s32.totalorder %v412_v37, %v1760_v5  ;;  %vm478_vm0 = vcmp.eq.s32.totalorder %v413_v44, %v1760_v5  ;;  %v2657_v1 = vmov 0 }
 0x161   :  { %v2655_v43 = vsel %vm2169_vm13, 4294967295, %v2654_v43  ;;  %1244 = vmatpush3.bf16.msk.msra.mxu1 %vm2169_vm13, %v2559_v14  ;;  %vm2179_vm2 = vmpackc.low %vm494_vm4, %vm493_vm10  ;;  %v2660_v58 = vmov 0  ;;  %vm180_vm4 = vcmp.lt.s32.totalorder %v1534_v17, 127 }
 0x162   :  { %2656 = vst [vmem:[#allocation17_spill] sm:$0xff] %v2655_v43  ;;  %v2658_v1 = vsel %vm2179_vm2, 4294967295, %v2657_v1  ;;  %1245 = vmatprep.subr.msk.bf16.mxu1 %vm2179_vm2, %v2559_v14  ;;  %vm2189_vm6 = vmpackc.low %vm478_vm0, %vm477_vm15 }
 0x163   :  { %2659 = vst [vmem:[#allocation18_spill] sm:$0xff] %v2658_v1  ;;  %v2661_v58 = vsel %vm2189_vm6, 4294967295, %v2660_v58 }
 0x164   :  { %2662 = vst [vmem:[#allocation19_spill] sm:$0xff] %v2661_v58 }
 0x165   :  { %1246 = vmatpush3.bf16.msk.msra.mxu1 %vm2189_vm6, %v2559_v14 }
 0x166   :  { %1275 = vmatprep.subr.msk.bf16.mxu1 %vm1843_vm3, %v2559_v14  ;;  %vm2673_vm3 = vnez %v2605_v21 }
 0x191   :  { %v173_v5 = vpop.permute.xlu0 %172 }
 0x195   :  { %v175_v54 = vpop.permute.xlu1 %174  ;;  %v177_v3 = vpop.permute.xlu0 %176 }
 0x196   :  { %v183_v14 = vsel %vm180_vm4, %v173_v5, %v175_v54  ;;  %v182_v39 = vsel %vm180_vm4, %v175_v54, %v177_v3 }
 0x197   :  { %v185_v43 = vmul.f32 %v183_v14, %v1710_v46  ;;  %v186_v49 = vmul.f32 %v182_v39, %v1719_v51 }
 0x199   :  { %v179_v38 = vpop.permute.xlu1 %178 }
 0x19a   :  { %v181_v25 = vsel %vm180_vm4, %v177_v3, %v179_v38 }
 0x19b   :  { %v187_v3 = vmul.f32 %v181_v25, %v1722_v52 }
 0x1a1   :  { %v206_v31 = vpop.permute.xlu0 %205 }
 0x1a5   :  { %v208_v19 = vpop.permute.xlu1 %207  ;;  %v210_v28 = vpop.permute.xlu0 %209 }
 0x1a6   :  { %v215_v11 = vsel %vm180_vm4, %v206_v31, %v208_v19  ;;  %v214_v35 = vsel %vm180_vm4, %v208_v19, %v210_v28 }
 0x1a7   :  { %v217_v58 = vmul.f32 %v215_v11, %v1737_v59  ;;  %v218_v30 = vmul.f32 %v214_v35, %v1746_v63  ;;  %v184_v59 = vsel %vm180_vm4, %v179_v38, %v173_v5 }
 0x1a8   :  { %v188_v35 = vmul.f32 %v184_v59, %v1731_v55 }
 0x1a9   :  { %v212_v37 = vpop.permute.xlu1 %211  ;;  %v313_v46 = vadd.f32 %v217_v58, %v185_v43 }
 0x1aa   :  { %v213_v1 = vsel %vm180_vm4, %v210_v28, %v212_v37  ;;  %v216_v19 = vsel %vm180_vm4, %v212_v37, %v206_v31  ;;  %v314_v31 = vadd.f32 %v218_v30, %v186_v49 }
 0x1ab   :  { %v258_v44 = vpop.permute.xlu0 %257  ;;  %v219_v51 = vmul.f32 %v213_v1, %v1748_v0  ;;  %v220_v28 = vmul.f32 %v216_v19, %v1767_v7 }
 0x1ad   :  { %v316_v7 = vadd.f32 %v220_v28, %v188_v35  ;;  %v51_v35 = vand.u32 3, %v1537_v20 }
 0x1af   :  { %v260_v15 = vpop.permute.xlu1 %259  ;;  %v262_v27 = vpop.permute.xlu0 %261  ;;  %vm2250_vm15 = vcmp.eq.s32.totalorder %v51_v35, 0 }
 0x1b0   :  { %v267_v63 = vsel %vm180_vm4, %v258_v44, %v260_v15  ;;  %v266_v54 = vsel %vm180_vm4, %v260_v15, %v262_v27 }
 0x1b1   :  { %v269_v14 = vmul.f32 %v267_v63, %v1771_v10  ;;  %v270_v39 = vmul.f32 %v266_v54, %v1801_v13  ;;  %v315_v10 = vadd.f32 %v219_v51, %v187_v3 }
 0x1b3   :  { %v317_v11 = vsub.f32 %v313_v46, %v269_v14  ;;  %v264_v5 = vpop.permute.xlu1 %263  ;;  %v294_v38 = vpop.permute.xlu0 %293  ;;  %v318_v37 = vsub.f32 %v314_v31, %v270_v39 }
 0x1b4   :  { %v265_v15 = vsel %vm180_vm4, %v262_v27, %v264_v5  ;;  %v268_v0 = vsel %vm180_vm4, %v264_v5, %v258_v44 }
 0x1b5   :  { %v271_v13 = vmul.f32 %v265_v15, %v1803_v33  ;;  %v272_v30 = vmul.f32 %v268_v0, %v1773_v22  ;;  %v321_v49 = vadd.f32 1e-07, %v317_v11  ;;  %v322_v1 = vadd.f32 1e-07, %v318_v37 }
 0x1b7   :  { %v319_v52 = vsub.f32 %v315_v10, %v271_v13  ;;  %v296_v25 = vpop.permute.xlu1 %295  ;;  %v298_v43 = vpop.permute.xlu0 %297  ;;  %v320_v58 = vsub.f32 %v316_v7, %v272_v30  ;;  %1348 = vrcp.f32 %v321_v49 }
 0x1b8   :  { %v303_v55 = vsel %vm180_vm4, %v294_v38, %v296_v25  ;;  %v302_v27 = vsel %vm180_vm4, %v296_v25, %v298_v43  ;;  %1350 = vrcp.f32 %v322_v1 }
 0x1b9   :  { %v305_v44 = vmul.f32 %v303_v55, %v1839_v50  ;;  %v306_v19 = vmul.f32 %v302_v27, %v1884_v16  ;;  %v323_v33 = vadd.f32 1e-07, %v319_v52  ;;  %v324_v54 = vadd.f32 1e-07, %v320_v58 }
 0x1bb   :  { %v309_v22 = vadd.f32 1e-07, %v305_v44  ;;  %v310_v59 = vadd.f32 1e-07, %v306_v19  ;;  %v300_v63 = vpop.permute.xlu1 %299 }
 0x1bc   :  { %v301_v46 = vsel %vm180_vm4, %v298_v43, %v300_v63  ;;  %v304_v51 = vsel %vm180_vm4, %v300_v63, %v294_v38  ;;  %v50_v38 = vand.u32 3, %v1534_v17  ;;  %v52_v17 = vand.u32 3, %v1549_v29  ;;  %vm1101_vm4 = vmpackc.low %vm2250_vm15, %vm2250_vm15 }
 0x1bd   :  { %1352 = vrcp.f32 %v309_v22  ;;  %v307_v31 = vmul.f32 %v301_v46, %v1886_v18  ;;  %v308_v50 = vmul.f32 %v304_v51, %v1841_v53  ;;  %v333_v5 = vsub.f32 %v309_v22, %v321_v49 }
 0x1be   :  { %1354 = vrcp.f32 %v310_v59  ;;  %v334_v15 = vsub.f32 %v310_v59, %v322_v1  ;;  %vm2254_vm9 = vcmp.eq.s32.totalorder %v50_v38, 0  ;;  %vm2267_vm10 = vcmp.eq.s32.totalorder %v52_v17, 0  ;;  %v2692_v17 = vld [vmem:[#allocation14_spill] sm:$0xff] }
 0x1bf   :  { %1356 = vrcp.f32 %v323_v33  ;;  %v311_v16 = vadd.f32 1e-07, %v307_v31  ;;  %v312_v28 = vadd.f32 1e-07, %v308_v50 }
 0x1c0   :  { %1358 = vrcp.f32 %v324_v54 }
 0x1c1   :  { %1360 = vrcp.f32 %v311_v16  ;;  %v1349_v3 = vpop.eup %1348  ;;  %v335_v58 = vsub.f32 %v311_v16, %v323_v33  ;;  %v336_v27 = vsub.f32 %v312_v28, %v324_v54  ;;  %v53_v33 = vand.u32 3, %v1541_v23 }
 0x1c2   :  { %1362 = vrcp.f32 %v312_v28  ;;  %v1351_v11 = vpop.eup %1350  ;;  %v326_v18 = vmul.f32 %v1349_v3, %v269_v14 }
 0x1c3   :  { %v328_v53 = vmul.f32 %v1351_v11, %v270_v39  ;;  %vm2271_vm0 = vcmp.eq.s32.totalorder %v53_v33, 0 }
 0x1c7   :  { %v1353_v37 = vpop.eup %1352 }
 0x1c8   :  { %v1355_v0 = vpop.eup %1354  ;;  %v338_v10 = vmul.f32 %v1353_v37, %v333_v5 }
 0x1c9   :  { %v1357_v7 = vpop.eup %1356  ;;  %v340_v52 = vmul.f32 %v1355_v0, %v334_v15 }
 0x1ca   :  { %v1359_v25 = vpop.eup %1358  ;;  %v345_v43 = vsub.f32 %v326_v18, %v338_v10  ;;  %v330_v44 = vmul.f32 %v1357_v7, %v271_v13 }
 0x1cb   :  { %v1361_v49 = vpop.eup %1360  ;;  %v346_v20 = vsub.f32 %v328_v53, %v340_v52  ;;  %v332_v22 = vmul.f32 %v1359_v25, %v272_v30 }
 0x1cc   :  { %v1363_v14 = vpop.eup %1362  ;;  %v342_v39 = vmul.f32 %v1361_v49, %v335_v58  ;;  %v2259_v19 = vsub.f32 1.0, %v345_v43  ;;  %v2671_v58 = vmov 1.0|1.0  }
 0x1cd   :  { %v344_v59 = vmul.f32 %v1363_v14, %v336_v27  ;;  %v350_v63 = vsub.f32 1.0, %v346_v20  ;;  %v2691_v20 = vld [vmem:[#allocation13_spill] sm:$0xff]  ;;  %v2694_v14 = vld [vmem:[#allocation15_spill] sm:$0xff] }
 0x1ce   :  { %v347_v46 = vsub.f32 %v330_v44, %v342_v39  ;;  %v361_v54 = vsel %vm2254_vm9, %v2259_v19, 0.0 }
 0x1cf   :  { %v362_v51 = vsel %vm2250_vm15, %v350_v63, 0.0  ;;  %v655_v31 = vpack.c.bf16 %v361_v54, %v361_v54  ;;  %v348_v29 = vsub.f32 %v332_v22, %v344_v59  ;;  %v1102_v52 = vpack.c.bf16 %v350_v63, %v350_v63  ;;  %vm1139_vm15 = vmpackc.low %vm2271_vm0, %vm2271_vm0 }
 0x1d0   :  { %v656_v50 = vpack.c.bf16 %v362_v51, %v362_v51  ;;  %v2275_v30 = vsub.f32 1.0, %v347_v46  ;;  %v1105_v59 = vpack.c.bf16 %v2259_v19, %v2259_v19  ;;  %v2702_v19 = vld [vmem:[#allocation12_spill] sm:$0xff] }
 0x1d1   :  { %v659_v16 = vunpack.c.l.bf16 %v655_v31  ;;  %v352_v28 = vsub.f32 1.0, %v348_v29  ;;  %v2700_v31 = vld [vmem:[#allocation19_spill] sm:$0xff] }
 0x1d2   :  { %v660_v3 = vunpack.c.l.bf16 %v656_v50  ;;  %v363_v11 = vsel %vm2267_vm10, %v2275_v30, 0.0  ;;  %v1143_v1 = vpack.c.bf16 %v2275_v30, %v2275_v30 }
 0x1d3   :  { %v2280_v5 = vsub.f32 %v361_v54, %v659_v16  ;;  %v364_v35 = vsel %vm2271_vm0, %v352_v28, 0.0  ;;  %v657_v37 = vpack.c.bf16 %v363_v11, %v363_v11  ;;  %v1140_v55 = vpack.c.bf16 %v352_v28, %v352_v28 }
 0x1d4   :  { %v664_v15 = vsub.f32 %v362_v51, %v660_v3  ;;  %v658_v38 = vpack.c.bf16 %v364_v35, %v364_v35  ;;  %vm2675_vm0 = vnez %v2609_v26 }
 0x1d5   :  { %v2286_v0 = vpack.c.bf16 %v2280_v5, %v2280_v5  ;;  %v661_v18 = vunpack.c.l.bf16 %v657_v37 }
 0x1d6   :  { %v668_v10 = vpack.c.bf16 %v664_v15, %v664_v15  ;;  %v662_v7 = vunpack.c.l.bf16 %v658_v38 }
 0x1d7   :  { %v2291_v53 = vsub.f32 %v363_v11, %v661_v18  ;;  %v671_v36 = vunpack.c.l.bf16 %v2286_v0 }
 0x1d8   :  { %715 = vmatprep.mubr.bf16.mxu0 %v668_v10  ;;  %v666_v25 = vsub.f32 %v364_v35, %v662_v7  ;;  %v672_v27 = vunpack.c.l.bf16 %v668_v10 }
 0x1d9   :  { %716 = vmatmul.mubr.bf16.vlgmr.msra.gmra.mrb[0].mxu0 %v2286_v0  ;;  %v2296_v43 = vpack.c.bf16 %v2291_v53, %v2291_v53 }
 0x1da   :  { %1254 = vmatpush3.bf16.msk.msra.mxu0 %vm1805_vm11, %v2671_v58  ;;  %1103 = vmatprep.mubr.msk.bf16.mxu0 %vm1101_vm4, %v1102_v52  ;;  %v670_v49 = vpack.c.bf16 %v666_v25, %v666_v25  ;;  %vm2672_vm4 = vnez %v2603_v2  ;;  %v676_v39 = vsub.f32 %v664_v15, %v672_v27 }
 0x1db   :  { %1255 = vmatprep.subr.msk.bf16.mxu0 %vm1826_vm14, %v2671_v58  ;;  %vm2674_vm14 = vnez %v2607_v8 }
 0x1dc   :  { %755 = vmatprep.mubr.bf16.mxu1 %v670_v49  ;;  %v674_v44 = vunpack.c.l.bf16 %v670_v49  ;;  %v680_v54 = vpack.c.bf16 %v676_v39, %v676_v39 }
 0x1dd   :  { %756 = vmatmul.mubr.bf16.vlgmr.msra.gmra.mrb[0].mxu1 %v2296_v43 }
 0x1de   :  { %1256 = vmatpush3.bf16.msk.msra.mxu0 %vm1856_vm5, %v2671_v58  ;;  %1276 = vmatpush3.bf16.msk.msra.mxu1 %vm2672_vm4, %v2671_v58  ;;  %vm2676_vm5 = vnez %v2611_v32  ;;  %vm2677_vm4 = vnez %v2613_v34  ;;  %v678_v51 = vsub.f32 %v666_v25, %v674_v44 }
 0x1df   :  { %1141 = vmatprep.mubr.msk.bf16.mxu1 %vm1139_vm15, %v1140_v55  ;;  %1257 = vmatprep.subr.msk.bf16.mxu0 %vm2673_vm3, %v2671_v58  ;;  %vm2678_vm15 = vnez %v2615_v40  ;;  %vm2679_vm3 = vnez %v2617_v42 }
 0x1e0   :  { %1277 = vmatprep.subr.msk.bf16.mxu1 %vm2674_vm14, %v2671_v58  ;;  %vm2680_vm14 = vnez %v2619_v56  ;;  %v682_v29 = vpack.c.bf16 %v678_v51, %v678_v51 }
 0x1e2   :  { %1258 = vmatpush3.bf16.msk.msra.mxu0 %vm2675_vm0, %v2671_v58  ;;  %1278 = vmatpush3.bf16.msk.msra.mxu1 %vm2676_vm5, %v2671_v58  ;;  %vm2681_vm0 = vnez %v2621_v57  ;;  %vm2682_vm5 = vnez %v2623_v62 }
 0x1e3   :  { %1259 = vmatprep.subr.msk.bf16.mxu0 %vm2677_vm4, %v2671_v58  ;;  %1279 = vmatprep.subr.msk.bf16.mxu1 %vm2678_vm15, %v2671_v58  ;;  %vm2683_vm4 = vnez %v2625_v6  ;;  %vm2684_vm15 = vnez %v2627_v24 }
 0x1e6   :  { %1260 = vmatpush3.bf16.msk.msra.mxu0 %vm2679_vm3, %v2671_v58  ;;  %1280 = vmatpush3.bf16.msk.msra.mxu1 %vm2680_vm14, %v2671_v58  ;;  %vm2685_vm3 = vnez %v2629_v9  ;;  %vm2686_vm14 = vnez %v2631_v12 }
 0x1e7   :  { %1261 = vmatprep.subr.msk.bf16.mxu0 %vm2681_vm0, %v2671_v58  ;;  %1281 = vmatprep.subr.msk.bf16.mxu1 %vm2682_vm5, %v2671_v58  ;;  %vm2687_vm0 = vnez %v2633_v41  ;;  %vm2688_vm5 = vnez %v2635_v45 }
 0x1ea   :  { %1262 = vmatpush3.bf16.msk.msra.mxu0 %vm2683_vm4, %v2671_v58  ;;  %1282 = vmatpush3.bf16.msk.msra.mxu1 %vm2684_vm15, %v2671_v58  ;;  %vm2689_vm4 = vnez %v2637_v47  ;;  %vm2690_vm15 = vnez %v2639_v60 }
 0x1eb   :  { %1263 = vmatprep.subr.msk.bf16.mxu0 %vm2685_vm3, %v2671_v58  ;;  %1283 = vmatprep.subr.msk.bf16.mxu1 %vm2686_vm14, %v2671_v58 }
 0x1ee   :  { %1264 = vmatpush3.bf16.msk.msra.mxu0 %vm2687_vm0, %v2671_v58  ;;  %1284 = vmatpush3.bf16.msk.msra.mxu1 %vm2688_vm5, %v2671_v58  ;;  %vm2693_vm5 = vnez %v2692_v17 }
 0x1ef   :  { %1265 = vmatprep.subr.msk.bf16.mxu0 %vm2689_vm4, %v2671_v58  ;;  %1285 = vmatprep.subr.msk.bf16.mxu1 %vm2690_vm15, %v2671_v58  ;;  %vm2695_vm4 = vnez %v2694_v14 }
 0x1f2   :  { %1266 = vmatpush3.bf16.msk.msra.mxu0 %vm2116_vm12, %v2671_v58  ;;  %1286 = vmatpush3.bf16.msk.msra.mxu1 %vm2129_vm7, %v2671_v58  ;;  %vm1104_vm7 = vmpackc.low %vm2254_vm9, %vm2254_vm9 }
 0x1f3   :  { %1267 = vmatprep.subr.msk.bf16.mxu0 %vm2693_vm5, %v2671_v58  ;;  %1287 = vmatprep.subr.msk.bf16.mxu1 %vm2695_vm4, %v2671_v58  ;;  %vm1142_vm9 = vmpackc.low %vm2267_vm10, %vm2267_vm10  ;;  %vm2705_vm10 = vnez %v2603_v2 }
 0x1f6   :  { %1268 = vmatpush3.bf16.msk.msra.mxu0 %vm2160_vm1, %v2671_v58  ;;  %1288 = vmatpush3.bf16.msk.msra.mxu1 %vm2169_vm13, %v2671_v58 }
 0x1f7   :  { %1289 = vmatprep.subr.msk.bf16.mxu1 %vm2179_vm2, %v2671_v58  ;;  %1297 = vmatprep.subr.msk.bf16.mxu0 %vm1788_vm8, %v2671_v58  ;;  %vm2701_vm8 = vnez %v2596_v48  ;;  %v673_v48 = vunpack.c.l.bf16 %v2296_v43 }
 0x1f9   :  { %1106 = vmatmul.mubr.msk.bf16.vlgmr.msra.gmra.mrb[4].mxu0 %vm1104_vm7, %v1105_v59  ;;  %vm2703_vm7 = vnez %v2702_v19 }
 0x1fa   :  { %1290 = vmatpush3.bf16.msk.msra.mxu1 %vm2189_vm6, %v2671_v58  ;;  %1298 = vmatpush3.bf16.msk.msra.mxu0 %vm1805_vm11, %v2671_v58  ;;  %vm2704_vm11 = vnez %v2601_v61  ;;  %vm2706_vm6 = vnez %v2605_v21  ;;  %v675_v61 = vsub.f32 %v2280_v5, %v671_v36  ;;  %v677_v21 = vsub.f32 %v2291_v53, %v673_v48 }
 0x1fb   :  { %875 = vmatprep.mubr.bf16.mxu0 %v680_v54  ;;  %1299 = vmatprep.subr.msk.bf16.mxu0 %vm2701_vm8, %v2671_v58  ;;  %vm2707_vm8 = vnez %v2607_v8 }
 0x1fc   :  { %1319 = vmatprep.subr.msk.bf16.mxu1 %vm2703_vm7, %v2671_v58  ;;  %vm2709_vm7 = vnez %v2611_v32  ;;  %v679_v2 = vpack.c.bf16 %v675_v61, %v675_v61  ;;  %v681_v8 = vpack.c.bf16 %v677_v21, %v677_v21 }
 0x1fd   :  { %1144 = vmatmul.mubr.msk.bf16.vlgmr.msra.gmra.mrb[4].mxu1 %vm1142_vm9, %v1143_v1  ;;  %vm2708_vm9 = vnez %v2609_v26 }
 0x1fe   :  { %1300 = vmatpush3.bf16.msk.msra.mxu0 %vm2704_vm11, %v2671_v58  ;;  %1320 = vmatpush3.bf16.msk.msra.mxu1 %vm2705_vm10, %v2671_v58  ;;  %vm2710_vm11 = vnez %v2613_v34  ;;  %vm2711_vm10 = vnez %v2615_v40 }
 0x1ff   :  { %915 = vmatprep.mubr.bf16.mxu1 %v682_v29  ;;  %1301 = vmatprep.subr.msk.bf16.mxu0 %vm2706_vm6, %v2671_v58  ;;  %vm2712_vm6 = vnez %v2617_v42 }
 0x200   :  { %1321 = vmatprep.subr.msk.bf16.mxu1 %vm2707_vm8, %v2671_v58  ;;  %vm2713_vm8 = vnez %v2619_v56 }
 0x202   :  { %1302 = vmatpush3.bf16.msk.msra.mxu0 %vm2708_vm9, %v2671_v58  ;;  %1322 = vmatpush3.bf16.msk.msra.mxu1 %vm2709_vm7, %v2671_v58  ;;  %vm2714_vm9 = vnez %v2621_v57  ;;  %vm2715_vm7 = vnez %v2623_v62 }
 0x203   :  { %1303 = vmatprep.subr.msk.bf16.mxu0 %vm2710_vm11, %v2671_v58  ;;  %1323 = vmatprep.subr.msk.bf16.mxu1 %vm2711_vm10, %v2671_v58  ;;  %vm2716_vm11 = vnez %v2625_v6  ;;  %vm2717_vm10 = vnez %v2627_v24 }
 0x206   :  { %1304 = vmatpush3.bf16.msk.msra.mxu0 %vm2712_vm6, %v2671_v58  ;;  %1324 = vmatpush3.bf16.msk.msra.mxu1 %vm2713_vm8, %v2671_v58  ;;  %vm2718_vm6 = vnez %v2635_v45  ;;  %vm2719_vm8 = vnez %v2637_v47 }
 0x207   :  { %1305 = vmatprep.subr.msk.bf16.mxu0 %vm2714_vm9, %v2671_v58  ;;  %1325 = vmatprep.subr.msk.bf16.mxu1 %vm2715_vm7, %v2671_v58 }
 0x20a   :  { %1306 = vmatpush3.bf16.msk.msra.mxu0 %vm2716_vm11, %v2671_v58  ;;  %1326 = vmatpush3.bf16.msk.msra.mxu1 %vm2717_vm10, %v2671_v58 }
 0x20b   :  { %1307 = vmatprep.subr.msk.bf16.mxu0 %vm2685_vm3, %v2671_v58  ;;  %1327 = vmatprep.subr.msk.bf16.mxu1 %vm2686_vm14, %v2671_v58  ;;  %vm2720_vm14 = vnez %v2691_v20  ;;  %vm2721_vm3 = vnez %v2700_v31 }
 0x20e   :  { %1308 = vmatpush3.bf16.msk.msra.mxu0 %vm2687_vm0, %v2671_v58  ;;  %1328 = vmatpush3.bf16.msk.msra.mxu1 %vm2718_vm6, %v2671_v58 }
 0x20f   :  { %1309 = vmatprep.subr.msk.bf16.mxu0 %vm2719_vm8, %v2671_v58  ;;  %1329 = vmatprep.subr.msk.bf16.mxu1 %vm2690_vm15, %v2671_v58 }
 0x212   :  { %1310 = vmatpush3.bf16.msk.msra.mxu0 %vm2116_vm12, %v2671_v58  ;;  %1330 = vmatpush3.bf16.msk.msra.mxu1 %vm2720_vm14, %v2671_v58 }
 0x213   :  { %1311 = vmatprep.subr.msk.bf16.mxu0 %vm2693_vm5, %v2671_v58  ;;  %1331 = vmatprep.subr.msk.bf16.mxu1 %vm2695_vm4, %v2671_v58 }
 0x216   :  { %1312 = vmatpush3.bf16.msk.msra.mxu0 %vm2160_vm1, %v2671_v58  ;;  %1332 = vmatpush3.bf16.msk.msra.mxu1 %vm2169_vm13, %v2671_v58 }
 0x217   :  { %1333 = vmatprep.subr.msk.bf16.mxu1 %vm2179_vm2, %v2671_v58 }
 0x219   :  { %876 = vmatmul.mubr.bf16.vlgmr.msra.gmra.mrb[8].mxu0 %v679_v2 }
 0x21a   :  { %1334 = vmatpush3.bf16.msk.msra.mxu1 %vm2721_vm3, %v2671_v58 }
 0x21d   :  { %916 = vmatmul.mubr.bf16.vlgmr.msra.gmra.mrb[8].mxu1 %v681_v8 }
 0x2ac   :  { %v1225_v26 = vpop.f32.mrb[0].mxu0 }
 0x2ad   :  { %v1226_v32 = vpop.f32.mrb[1].mxu0 }
 0x2ae   :  { %v1227_v34 = vadd.f32 %v1226_v32, %v1225_v26  ;;  %v1228_v40 = vpop.f32.mrb[2].mxu0 }
 0x2af   :  { %v1229_v42 = vpop.f32.mrb[3].mxu0 }
 0x2b0   :  { %v1247_v56 = vpop.f32.mrb[0].mxu1 }
 0x2b1   :  { %v1248_v57 = vpop.f32.mrb[1].mxu1 }
 0x2b2   :  { %v1249_v62 = vadd.f32 %v1248_v57, %v1247_v56  ;;  %v1250_v6 = vpop.f32.mrb[2].mxu1 }
 0x2b3   :  { %v1251_v24 = vpop.f32.mrb[3].mxu1 }
 0x2b4   :  { %v758_v9 = vadd.f32 %v1249_v62, %v1227_v34 }
 0x2cc   :  { %v1269_v12 = vpop.f32.mrb[4].mxu0 }
 0x2cd   :  { %v1270_v41 = vpop.f32.mrb[5].mxu0 }
 0x2ce   :  { %v1271_v45 = vadd.f32 %v1270_v41, %v1269_v12  ;;  %v1272_v47 = vpop.f32.mrb[6].mxu0 }
 0x2cf   :  { %v1273_v60 = vpop.f32.mrb[7].mxu0 }
 0x2d0   :  { %v798_v4 = vadd.f32 %v1271_v45, %v758_v9  ;;  %v1291_v13 = vpop.f32.mrb[4].mxu1 }
 0x2d1   :  { %v1292_v50 = vpop.f32.mrb[5].mxu1 }
 0x2d2   :  { %v1293_v23 = vadd.f32 %v1292_v50, %v1291_v13  ;;  %v1294_v30 = vpop.f32.mrb[6].mxu1 }
 0x2d3   :  { %v1295_v16 = vpop.f32.mrb[7].mxu1 }
 0x2d4   :  { %v838_v28 = vadd.f32 %v1293_v23, %v798_v4 }
 0x2ec   :  { %v1313_v3 = vpop.f32.mrb[8].mxu0 }
 0x2ed   :  { %v1314_v11 = vpop.f32.mrb[9].mxu0 }
 0x2ee   :  { %v1315_v5 = vadd.f32 %v1314_v11, %v1313_v3  ;;  %v1316_v35 = vpop.f32.mrb[10].mxu0 }
 0x2ef   :  { %v1317_v37 = vpop.f32.mrb[11].mxu0 }
 0x2f0   :  { %v1335_v15 = vpop.f32.mrb[8].mxu1 }
 0x2f1   :  { %v1336_v38 = vpop.f32.mrb[9].mxu1 }
 0x2f2   :  { %v1337_v0 = vadd.f32 %v1336_v38, %v1335_v15  ;;  %v1338_v18 = vpop.f32.mrb[10].mxu1 }
 0x2f3   :  { %v1339_v10 = vpop.f32.mrb[11].mxu1 }
 0x2f4   :  { %v918_v7 = vadd.f32 %v1337_v0, %v1315_v5 }
 0x2f6   :  { %v923_v53 = vadd.f32 %v918_v7, %v838_v28 }
 0x2f8   :  { %924 = vst [vmem:[#allocation7] sm:$0xff] %v923_v53 }
 0x2f9   :  { %1419 = shalt.err (!%p1416_p6)
}
 0x2fa   :  { %s1420_s11 = scalar_lea.hbm %s2516_s2, 128 }
 0x2fb   :  { %p1421_p7 = scmp.ne.s32.totalorder %s2516_s2, %s1420_s11  ;;  %p1424_p8 = scmp.lt.u32.totalorder %s1420_s11, %s2516_s2 }
 0x2fd   :  { %p1426_p9 = pnand %p1424_p8, %p1421_p7 }
 0x2ff   :  { %1429 = shalt.err (!%p1426_p9)
}
 0x300   :  { %934 = dma.vmem_to_hbm [thread:$0]  %s932_s7, 128, %s2516_s2, [#allocation4]  }
 0x301   :  { %1434 = dma.done.wait [#allocation4], 128  }
 0x302   :  { %1435 = vsyncadd [#allocation4], 4294967168 }
 0x303   :  { %938 = vsyncpa [#allocation3], 1 }
 0x304   :  { %939 = vsyncpa [#allocation6], 1 }
 0x305   :  { %940 = vsyncpa [#allocation4], 1 }

</bundles_post_ra>
